<compile_context>
chip_gen: v7x
topology: tpu7x:2x2x1
jax: 0.10.0
libtpu: 0.0.40
codegen_flags: <defaults>
</compile_context>

<pallas_src>
import functools

import jax
import jax.numpy as jnp
from jax.experimental import pallas as pl
from jax.experimental.pallas import tpu as pltpu

EMB_DIM = 300          # torch embedding_dim
EMB_PAD = 384          # channel dim padded to 3 * 128 lanes
HID = 128
NUM_CLASSES = 5
CLS_PAD = 128          # lane-padded logits width
KSIZE = 3


def cnn_kernel(x_ref, w1_ref, b1_ref, w2_ref, b2_ref, wfc_ref, bfc_ref,
               out_ref, *, lp, l3):
    """One batch tile. x_ref: (tb*lp, 384) bf16 rows, channels on lanes."""
    m = x_ref.shape[0]
    tb = m // lp

    def shift_up(z, k):
        # out[i] = z[i + k]  (rows wrap around; wrapped rows are masked later).
        # Sublane rotate on the XLU -- avoids relayout copies that sublane-offset
        # slices of the inputs would materialize.
        return pltpu.roll(z, m - k, axis=0) if k else z

    x = x_ref[...]                                               # (m, 384) bf16

    # ---- Conv1d(300->128, k=3): one full-length matmul per tap, then align. ----
    z = [jnp.dot(x, w1_ref[k], preferred_element_type=jnp.float32)
         for k in range(KSIZE)]
    y1 = shift_up(z[0], 0) + shift_up(z[1], 1) + shift_up(z[2], 2) + b1_ref[...]

    # ---- MaxPool1d(3,1) -> ReLU (f32 VPU: safe on v5e); bf16 only as MXU input. ----
    p1 = jnp.maximum(jnp.maximum(y1, shift_up(y1, 1)), shift_up(y1, 2))
    r1 = jnp.maximum(p1, 0.0).astype(jnp.bfloat16)               # (m, 128)

    # ---- Conv1d(128->128, k=3). ----
    u = [jnp.dot(r1, w2_ref[k], preferred_element_type=jnp.float32)
         for k in range(KSIZE)]
    y2 = shift_up(u[0], 0) + shift_up(u[1], 1) + shift_up(u[2], 2) + b2_ref[...]

    # ---- MaxPool(3,1) -> ReLU -> global max over length
    #      == ReLU(max over the l3 valid positions of y2)  (exact fusion). ----
    row = jax.lax.broadcasted_iota(jnp.int32, (m, HID), 0)
    valid = (row % lp) < l3                      # rows past the valid conv extent
    y2 = jnp.where(valid, y2, -jnp.inf)          # (incl. length/batch padding)
    x1 = jnp.maximum(jnp.max(y2.reshape(tb, lp, HID), axis=1), 0.0)   # (tb, 128)

    # ---- Linear(128 -> 5), lane-padded to 128. ----
    out_ref[...] = (jnp.dot(x1, wfc_ref[...], preferred_element_type=jnp.float32)
                    + bfc_ref[...])


def _vmem_budget():
    # Generation-aware sizing: 128 MiB VMEM parts (v5e/v6e) take a bigger row
    # tile than 64 MiB parts (v7x).  Fully guarded: fall back to the smallest
    # (v7x-safe) budget if the query is unavailable.
    try:
        vmem = pltpu.get_tpu_info().vmem_capacity_bytes
    except Exception:
        vmem = 64 * 1024 * 1024
    if vmem >= 100 * 1024 * 1024:
        return 4096, 80 * 1024 * 1024            # rows/step target, scoped-VMEM limit
    return 2048, 48 * 1024 * 1024


def _choose_tiling(batch, lp, rows_target):
    # Rows per grid step ~= rows_target; tb is a multiple of 8 so the output
    # block stays (8,128)-friendly; >= 2 grid steps so both v7x TensorCores get
    # work (single-TC v5e/v6e are unaffected).
    tb = max(1, rows_target // lp)
    tb = min(tb, batch if batch < 2 else (batch + 1) // 2)
    tb = ((tb + 7) // 8) * 8
    grid = max(1, -(-batch // tb))
    if batch >= 2:
        grid = max(grid, 2)
    return tb, grid, grid * tb
    # NOTE: very long sequences (lp >> rows_target) would also need tiling along
    # the length axis (conv halos); typical text-CNN lengths do not.


def init_params(key, vocab_size):
    ks = jax.random.split(key, 7)
    s = 0.05
    f32, bf16 = jnp.float32, jnp.bfloat16

    emb = s * jax.random.normal(ks[0], (vocab_size, EMB_DIM), f32)
    w1 = s * jax.random.normal(ks[1], (KSIZE, EMB_DIM, HID), f32)
    w2 = s * jax.random.normal(ks[3], (KSIZE, HID, HID), f32)
    return {
        # embedding table, channel-padded 300 -> 384 with zeros, streamed as bf16
        "emb": jnp.pad(emb, ((0, 0), (0, EMB_PAD - EMB_DIM))).astype(bf16),
        # conv1: torch weight (128, 300, 3) stored as (k, in, out), in padded to 384
        "w1": jnp.pad(w1, ((0, 0), (0, EMB_PAD - EMB_DIM), (0, 0))).astype(bf16),
        "b1": s * jax.random.normal(ks[2], (1, HID), f32),
        # conv2: (k, in, out) = (3, 128, 128)
        "w2": w2.astype(bf16),
        "b2": s * jax.random.normal(ks[4], (1, HID), f32),
        # mlp: torch Linear weight (5, 128) stored transposed as (128, 5)
        "wfc": s * jax.random.normal(ks[5], (HID, NUM_CLASSES), f32),
        "bfc": s * jax.random.normal(ks[6], (1, NUM_CLASSES), f32),
    }


@jax.jit
def cnn_forward(ids, params):
    """ids: (B, L) int token ids -> (B, 5) float32 logits."""
    B, L = ids.shape
    if L < 3 * KSIZE:
        raise ValueError(f"sequence length must be >= {3 * KSIZE}, got {L}")
    l3 = L - 3 * (KSIZE - 1)                     # valid conv2 positions (= L - 6)
    lp = ((L + 7) // 8) * 8                      # pad length to a sublane multiple

    rows_target, vmem_limit = _vmem_budget()
    tb, grid, bp = _choose_tiling(B, lp, rows_target)

    # Embedding gather stays in XLA (bf16); ids padded to the (bp, lp) tile grid.
    # TODO(synk): for VMEM-resident vocabularies the gather could move in-kernel
    # (scalar-prefetched ids + DMA gather) to remove this HBM round trip.
    ids_p = jnp.pad(ids, ((0, bp - B), (0, lp - L)))
    emb = jnp.take(params["emb"], ids_p, axis=0)                 # (bp, lp, 384) bf16
    x = emb.reshape(bp * lp, EMB_PAD)

    wfc = jnp.pad(params["wfc"], ((0, 0), (0, CLS_PAD - NUM_CLASSES)))
    bfc = jnp.pad(params["bfc"], ((0, 0), (0, CLS_PAD - NUM_CLASSES)))

    kernel = functools.partial(cnn_kernel, lp=lp, l3=l3)
    out = pl.pallas_call(
        kernel,
        out_shape=jax.ShapeDtypeStruct((bp, CLS_PAD), jnp.float32),
        grid=(grid,),
        in_specs=[
            pl.BlockSpec((tb * lp, EMB_PAD), lambda i: (i, 0)),        # emb rows
            pl.BlockSpec((KSIZE, EMB_PAD, HID), lambda i: (0, 0, 0)),  # w1 (resident)
            pl.BlockSpec((1, HID), lambda i: (0, 0)),                  # b1
            pl.BlockSpec((KSIZE, HID, HID), lambda i: (0, 0, 0)),      # w2
            pl.BlockSpec((1, HID), lambda i: (0, 0)),                  # b2
            pl.BlockSpec((HID, CLS_PAD), lambda i: (0, 0)),            # wfc (padded)
            pl.BlockSpec((1, CLS_PAD), lambda i: (0, 0)),              # bfc (padded)
        ],
        out_specs=pl.BlockSpec((tb, CLS_PAD), lambda i: (i, 0)),
        compiler_params=pltpu.CompilerParams(
            dimension_semantics=("parallel",),
            vmem_limit_bytes=vmem_limit,
        ),
    )(x, params["w1"], params["b1"], params["w2"], params["b2"], wfc, bfc)

    return out[:B, :NUM_CLASSES]


def cnn_reference(ids, params):
    """Pure-JAX mirror of the PyTorch forward, on the same (bf16) params."""
    emb = jnp.take(params["emb"], ids, axis=0).astype(jnp.float32)   # (B, L, 384)

    def conv1d(x, w, b):            # x: (B, L, Cin), w: (k, Cin, Cout)
        lo = x.shape[1] - (KSIZE - 1)
        y = sum(jnp.einsum("blc,co->blo", x[:, j:j + lo, :],
                           w[j].astype(jnp.float32)) for j in range(KSIZE))
        return y + b

    def maxpool3(x):
        lo = x.shape[1] - 2
        return jnp.maximum(jnp.maximum(x[:, 0:lo], x[:, 1:lo + 1]), x[:, 2:lo + 2])

    y = jnp.maximum(maxpool3(conv1d(emb, params["w1"], params["b1"])), 0.0)
    y = y.astype(jnp.bfloat16).astype(jnp.float32)   # kernel feeds conv2 in bf16
    y = jnp.maximum(maxpool3(conv1d(y, params["w2"], params["b2"])), 0.0)
    x1 = jnp.max(y, axis=1)                          # global max over length
    return x1 @ params["wfc"] + params["bfc"]        # (B, 5)


if __name__ == "__main__":
    key = jax.random.PRNGKey(0)
    k_param, k_ids = jax.random.split(key)

    VOCAB = 50          # synthetic len(word2id) + 1
    B, L = 2, 16        # L must be >= 9 so the second MaxPool output is non-empty

    params = init_params(k_param, VOCAB)
    ids = jax.random.randint(k_ids, (B, L), 0, VOCAB, dtype=jnp.int32)

    out = jax.block_until_ready(cnn_forward(ids, params))
    assert out.shape == (B, NUM_CLASSES) and out.dtype == jnp.float32
    assert bool(jnp.all(jnp.isfinite(out)))

    ref = cnn_reference(ids, params)
    assert jnp.allclose(out, ref, rtol=5e-2, atol=5e-3), (out, ref)

    print("KERNEL_OK")
</pallas_src>

<mosaic_0001>
module attributes {stable_mosaic.version = 11 : i64} {
  func.func @cnn_kernel(%arg0: i32, %arg1: memref<128x384xbf16, #tpu.memory_space<vmem>>, %arg2: memref<3x384x128xbf16, #tpu.memory_space<vmem>>, %arg3: memref<1x128xf32, #tpu.memory_space<vmem>>, %arg4: memref<3x128x128xbf16, #tpu.memory_space<vmem>>, %arg5: memref<1x128xf32, #tpu.memory_space<vmem>>, %arg6: memref<128x128xf32, #tpu.memory_space<vmem>>, %arg7: memref<1x128xf32, #tpu.memory_space<vmem>>, %arg8: memref<8x128xf32, #tpu.memory_space<vmem>>) attributes {dimension_semantics = [#tpu.dimension_semantics<parallel>], iteration_bounds = array<i64: 2>, scalar_prefetch = 0 : i64, scratch_operands = 0 : i64, tpu.core_type = #tpu.core_type<tc>, window_params = [{transform_indices = @transform_0, window_bounds = array<i64: 128, 384>}, {pipeline_mode = #tpu.pipeline_mode<synchronous>, transform_indices = @transform_1, window_bounds = array<i64: 3, 384, 128>}, {pipeline_mode = #tpu.pipeline_mode<synchronous>, transform_indices = @transform_2, window_bounds = array<i64: 1, 128>}, {pipeline_mode = #tpu.pipeline_mode<synchronous>, transform_indices = @transform_3, window_bounds = array<i64: 3, 128, 128>}, {pipeline_mode = #tpu.pipeline_mode<synchronous>, transform_indices = @transform_4, window_bounds = array<i64: 1, 128>}, {pipeline_mode = #tpu.pipeline_mode<synchronous>, transform_indices = @transform_5, window_bounds = array<i64: 128, 128>}, {pipeline_mode = #tpu.pipeline_mode<synchronous>, transform_indices = @transform_6, window_bounds = array<i64: 1, 128>}, {transform_indices = @transform_7, window_bounds = array<i64: 8, 128>}]} {
    %c0 = arith.constant 0 : index
    %c0_0 = arith.constant 0 : index
    %0 = vector.load %arg1[%c0, %c0_0] : memref<128x384xbf16, #tpu.memory_space<vmem>>, vector<128x384xbf16>
    %c0_1 = arith.constant 0 : index
    %c0_2 = arith.constant 0 : index
    %c0_3 = arith.constant 0 : index
    %1 = vector.load %arg2[%c0_1, %c0_2, %c0_3] : memref<3x384x128xbf16, #tpu.memory_space<vmem>>, vector<1x384x128xbf16>
    %2 = vector.shape_cast %1 : vector<1x384x128xbf16> to vector<384x128xbf16>
    %cst = arith.constant dense<0.000000e+00> : vector<128x128xf32>
    %3 = tpu.matmul %0, %2, %cst {dimension_numbers = #tpu.dot_dimension_numbers<[1], [0], [0], [1], [0, 0, 1, 1], [], []>} : vector<128x384xbf16>, vector<384x128xbf16>, vector<128x128xf32> -> vector<128x128xf32>
    %c1 = arith.constant 1 : index
    %c0_4 = arith.constant 0 : index
    %c0_5 = arith.constant 0 : index
    %4 = vector.load %arg2[%c1, %c0_4, %c0_5] : memref<3x384x128xbf16, #tpu.memory_space<vmem>>, vector<1x384x128xbf16>
    %5 = vector.shape_cast %4 : vector<1x384x128xbf16> to vector<384x128xbf16>
    %cst_6 = arith.constant dense<0.000000e+00> : vector<128x128xf32>
    %6 = tpu.matmul %0, %5, %cst_6 {dimension_numbers = #tpu.dot_dimension_numbers<[1], [0], [0], [1], [0, 0, 1, 1], [], []>} : vector<128x384xbf16>, vector<384x128xbf16>, vector<128x128xf32> -> vector<128x128xf32>
    %c2 = arith.constant 2 : index
    %c0_7 = arith.constant 0 : index
    %c0_8 = arith.constant 0 : index
    %7 = vector.load %arg2[%c2, %c0_7, %c0_8] : memref<3x384x128xbf16, #tpu.memory_space<vmem>>, vector<1x384x128xbf16>
    %8 = vector.shape_cast %7 : vector<1x384x128xbf16> to vector<384x128xbf16>
    %cst_9 = arith.constant dense<0.000000e+00> : vector<128x128xf32>
    %9 = tpu.matmul %0, %8, %cst_9 {dimension_numbers = #tpu.dot_dimension_numbers<[1], [0], [0], [1], [0, 0, 1, 1], [], []>} : vector<128x384xbf16>, vector<384x128xbf16>, vector<128x128xf32> -> vector<128x128xf32>
    %c127_i32 = arith.constant 127 : i32
    %10 = tpu.dynamic_rotate %6 by %c127_i32 dim 0 : vector<128x128xf32>, i32 -> vector<128x128xf32>
    %11 = arith.addf %3, %10 : vector<128x128xf32>
    %c126_i32 = arith.constant 126 : i32
    %12 = tpu.dynamic_rotate %9 by %c126_i32 dim 0 : vector<128x128xf32>, i32 -> vector<128x128xf32>
    %13 = arith.addf %11, %12 : vector<128x128xf32>
    %c0_10 = arith.constant 0 : index
    %c0_11 = arith.constant 0 : index
    %14 = vector.load %arg3[%c0_10, %c0_11] : memref<1x128xf32, #tpu.memory_space<vmem>>, vector<1x128xf32>
    %15 = vector.broadcast %14 : vector<1x128xf32> to vector<128x128xf32>
    %16 = arith.addf %13, %15 : vector<128x128xf32>
    %c127_i32_12 = arith.constant 127 : i32
    %17 = tpu.dynamic_rotate %16 by %c127_i32_12 dim 0 : vector<128x128xf32>, i32 -> vector<128x128xf32>
    %18 = arith.maximumf %16, %17 : vector<128x128xf32>
    %c126_i32_13 = arith.constant 126 : i32
    %19 = tpu.dynamic_rotate %16 by %c126_i32_13 dim 0 : vector<128x128xf32>, i32 -> vector<128x128xf32>
    %20 = arith.maximumf %18, %19 : vector<128x128xf32>
    %cst_14 = arith.constant 0.000000e+00 : f32
    %21 = vector.broadcast %cst_14 : f32 to vector<128x128xf32>
    %22 = arith.maximumf %20, %21 : vector<128x128xf32>
    %23 = arith.truncf %22 : vector<128x128xf32> to vector<128x128xbf16>
    %c0_15 = arith.constant 0 : index
    %c0_16 = arith.constant 0 : index
    %c0_17 = arith.constant 0 : index
    %24 = vector.load %arg4[%c0_15, %c0_16, %c0_17] : memref<3x128x128xbf16, #tpu.memory_space<vmem>>, vector<1x128x128xbf16>
    %25 = vector.shape_cast %24 : vector<1x128x128xbf16> to vector<128x128xbf16>
    %cst_18 = arith.constant dense<0.000000e+00> : vector<128x128xf32>
    %26 = tpu.matmul %23, %25, %cst_18 {dimension_numbers = #tpu.dot_dimension_numbers<[1], [0], [0], [1], [0, 0, 1, 1], [], []>} : vector<128x128xbf16>, vector<128x128xbf16>, vector<128x128xf32> -> vector<128x128xf32>
    %c1_19 = arith.constant 1 : index
    %c0_20 = arith.constant 0 : index
    %c0_21 = arith.constant 0 : index
    %27 = vector.load %arg4[%c1_19, %c0_20, %c0_21] : memref<3x128x128xbf16, #tpu.memory_space<vmem>>, vector<1x128x128xbf16>
    %28 = vector.shape_cast %27 : vector<1x128x128xbf16> to vector<128x128xbf16>
    %cst_22 = arith.constant dense<0.000000e+00> : vector<128x128xf32>
    %29 = tpu.matmul %23, %28, %cst_22 {dimension_numbers = #tpu.dot_dimension_numbers<[1], [0], [0], [1], [0, 0, 1, 1], [], []>} : vector<128x128xbf16>, vector<128x128xbf16>, vector<128x128xf32> -> vector<128x128xf32>
    %c2_23 = arith.constant 2 : index
    %c0_24 = arith.constant 0 : index
    %c0_25 = arith.constant 0 : index
    %30 = vector.load %arg4[%c2_23, %c0_24, %c0_25] : memref<3x128x128xbf16, #tpu.memory_space<vmem>>, vector<1x128x128xbf16>
    %31 = vector.shape_cast %30 : vector<1x128x128xbf16> to vector<128x128xbf16>
    %cst_26 = arith.constant dense<0.000000e+00> : vector<128x128xf32>
    %32 = tpu.matmul %23, %31, %cst_26 {dimension_numbers = #tpu.dot_dimension_numbers<[1], [0], [0], [1], [0, 0, 1, 1], [], []>} : vector<128x128xbf16>, vector<128x128xbf16>, vector<128x128xf32> -> vector<128x128xf32>
    %c127_i32_27 = arith.constant 127 : i32
    %33 = tpu.dynamic_rotate %29 by %c127_i32_27 dim 0 : vector<128x128xf32>, i32 -> vector<128x128xf32>
    %34 = arith.addf %26, %33 : vector<128x128xf32>
    %c126_i32_28 = arith.constant 126 : i32
    %35 = tpu.dynamic_rotate %32 by %c126_i32_28 dim 0 : vector<128x128xf32>, i32 -> vector<128x128xf32>
    %36 = arith.addf %34, %35 : vector<128x128xf32>
    %c0_29 = arith.constant 0 : index
    %c0_30 = arith.constant 0 : index
    %37 = vector.load %arg5[%c0_29, %c0_30] : memref<1x128xf32, #tpu.memory_space<vmem>>, vector<1x128xf32>
    %38 = vector.broadcast %37 : vector<1x128xf32> to vector<128x128xf32>
    %39 = arith.addf %36, %38 : vector<128x128xf32>
    %40 = tpu.iota {dimensions = array<i32: 0>} : vector<128x128xi32>
    %c16_i32 = arith.constant 16 : i32
    %c0_i32 = arith.constant 0 : i32
    %41 = arith.cmpi eq, %c16_i32, %c0_i32 : i32
    %c1_i32 = arith.constant 1 : i32
    %42 = arith.select %41, %c1_i32, %c16_i32 : i32
    %43 = vector.broadcast %42 : i32 to vector<128x128xi32>
    %44 = arith.remsi %40, %43 : vector<128x128xi32>
    %c0_i32_31 = arith.constant 0 : i32
    %45 = vector.broadcast %c0_i32_31 : i32 to vector<128x128xi32>
    %46 = arith.cmpi ne, %44, %45 : vector<128x128xi32>
    %c0_i32_32 = arith.constant 0 : i32
    %47 = vector.broadcast %c0_i32_32 : i32 to vector<128x128xi32>
    %48 = arith.cmpi slt, %44, %47 : vector<128x128xi32>
    %c0_i32_33 = arith.constant 0 : i32
    %49 = arith.cmpi slt, %42, %c0_i32_33 : i32
    %50 = vector.broadcast %49 : i1 to vector<128x128xi1>
    %51 = vector.broadcast %50 : vector<128x128xi1> to vector<128x128xi1>
    %52 = arith.xori %48, %51 : vector<128x128xi1>
    %53 = arith.andi %52, %46 : vector<128x128xi1>
    %54 = vector.broadcast %42 : i32 to vector<128x128xi32>
    %55 = arith.addi %44, %54 : vector<128x128xi32>
    %56 = arith.select %53, %55, %44 : vector<128x128xi1>, vector<128x128xi32>
    %c10_i32 = arith.constant 10 : i32
    %57 = vector.broadcast %c10_i32 : i32 to vector<128x128xi32>
    %58 = arith.cmpi slt, %56, %57 : vector<128x128xi32>
    %cst_34 = arith.constant 0xFF800000 : f32
    %59 = vector.broadcast %cst_34 : f32 to vector<128x128xf32>
    %60 = arith.select %58, %39, %59 : vector<128x128xi1>, vector<128x128xf32>
    %61 = vector.shape_cast %60 : vector<128x128xf32> to vector<8x16x128xf32>
    %cst_35 = arith.constant dense<0xFF800000> : vector<8x128xf32>
    %62 = vector.multi_reduction <maximumf>, %61, %cst_35 [1] : vector<8x16x128xf32> to vector<8x128xf32>
    %cst_36 = arith.constant 0.000000e+00 : f32
    %63 = vector.broadcast %cst_36 : f32 to vector<8x128xf32>
    %64 = arith.maximumf %62, %63 : vector<8x128xf32>
    %c0_37 = arith.constant 0 : index
    %c0_38 = arith.constant 0 : index
    %65 = vector.load %arg6[%c0_37, %c0_38] : memref<128x128xf32, #tpu.memory_space<vmem>>, vector<128x128xf32>
    %cst_39 = arith.constant dense<0.000000e+00> : vector<8x128xf32>
    %66 = tpu.matmul %64, %65, %cst_39 {dimension_numbers = #tpu.dot_dimension_numbers<[1], [0], [0], [1], [0, 0, 1, 1], [], []>} : vector<8x128xf32>, vector<128x128xf32>, vector<8x128xf32> -> vector<8x128xf32>
    %c0_40 = arith.constant 0 : index
    %c0_41 = arith.constant 0 : index
    %67 = vector.load %arg7[%c0_40, %c0_41] : memref<1x128xf32, #tpu.memory_space<vmem>>, vector<1x128xf32>
    %68 = vector.broadcast %67 : vector<1x128xf32> to vector<8x128xf32>
    %69 = arith.addf %66, %68 : vector<8x128xf32>
    %c0_42 = arith.constant 0 : index
    %c0_43 = arith.constant 0 : index
    %70 = vector.load %arg8[%c0_42, %c0_43] : memref<8x128xf32, #tpu.memory_space<vmem>>, vector<8x128xf32>
    tpu.vector_store %arg8[%c0_42, %c0_43], %69 {strides = array<i32>} : memref<8x128xf32, #tpu.memory_space<vmem>>, vector<8x128xf32>,
    return
  }
  func.func @transform_0(%arg0: i32) -> (i32, i32) {
    %c0_i32 = arith.constant 0 : i32
    %c0_i32_0 = arith.constant 0 : i32
    return %arg0, %c0_i32 : i32, i32
  }
  func.func @transform_1(%arg0: i32) -> (i32, i32, i32) {
    %c0_i32 = arith.constant 0 : i32
    %c0_i32_0 = arith.constant 0 : i32
    %c0_i32_1 = arith.constant 0 : i32
    %c0_i32_2 = arith.constant 0 : i32
    return %c0_i32, %c0_i32_0, %c0_i32_1 : i32, i32, i32
  }
  func.func @transform_2(%arg0: i32) -> (i32, i32) {
    %c0_i32 = arith.constant 0 : i32
    %c0_i32_0 = arith.constant 0 : i32
    %c0_i32_1 = arith.constant 0 : i32
    return %c0_i32, %c0_i32_0 : i32, i32
  }
  func.func @transform_3(%arg0: i32) -> (i32, i32, i32) {
    %c0_i32 = arith.constant 0 : i32
    %c0_i32_0 = arith.constant 0 : i32
    %c0_i32_1 = arith.constant 0 : i32
    %c0_i32_2 = arith.constant 0 : i32
    return %c0_i32, %c0_i32_0, %c0_i32_1 : i32, i32, i32
  }
  func.func @transform_4(%arg0: i32) -> (i32, i32) {
    %c0_i32 = arith.constant 0 : i32
    %c0_i32_0 = arith.constant 0 : i32
    %c0_i32_1 = arith.constant 0 : i32
    return %c0_i32, %c0_i32_0 : i32, i32
  }
  func.func @transform_5(%arg0: i32) -> (i32, i32) {
    %c0_i32 = arith.constant 0 : i32
    %c0_i32_0 = arith.constant 0 : i32
    %c0_i32_1 = arith.constant 0 : i32
    return %c0_i32, %c0_i32_0 : i32, i32
  }
  func.func @transform_6(%arg0: i32) -> (i32, i32) {
    %c0_i32 = arith.constant 0 : i32
    %c0_i32_0 = arith.constant 0 : i32
    %c0_i32_1 = arith.constant 0 : i32
    return %c0_i32, %c0_i32_0 : i32, i32
  }
  func.func @transform_7(%arg0: i32) -> (i32, i32) {
    %c0_i32 = arith.constant 0 : i32
    %c0_i32_0 = arith.constant 0 : i32
    return %arg0, %c0_i32 : i32, i32
  }
}

</mosaic_0001>

<bundles_post_ra>
// kernel: cnn_forward.1
= control target key start
LH: loop header
LB: loop body
LE: loop exit
PB: predicated region body
PF: predicated region fallthrough
CT: control target
= control target key end

     0   :  { %s3899_s24 = smov 0   ;;  %s5006_s0 = inlined_call_operand.vmem [shape: bf16[256,384], index: 0, kind: input, shape index: {}]   ;;  %s5007_s1 = inlined_call_operand.vmem [shape: bf16[3,384,128], index: 1, kind: input, shape index: {}]   ;;  %s5008_s2 = inlined_call_operand.vmem [shape: f32[1,128], index: 2, kind: input, shape index: {}]   ;;  %s5009_s3 = inlined_call_operand.vmem [shape: bf16[3,128,128], index: 3, kind: input, shape index: {}]   ;;  %s5010_s4 = inlined_call_operand.vmem [shape: f32[1,128], index: 4, kind: input, shape index: {}]   ;;  %s5011_s5 = inlined_call_operand.vmem [shape: f32[128,128], index: 5, kind: input, shape index: {}]   ;;  %s5012_s6 = inlined_call_operand.vmem [shape: f32[1,128], index: 6, kind: input, shape index: {}]   ;;  %s5013_s7 = inlined_call_operand.vmem [shape: f32[16,128], index: 7, kind: output, shape index: {}]  }
   0x1 LB: > { %s3905_s25 = sadd.s32 4294967295, %s3854_s24   ;;  %p2895_p0 = scmp.ge.s32.totalorder %s3854_s24, 1  ;;  %s3854_s24 = sphi %s3899_s24, %s17_s24  }
   0x2   : > { %p239_p1 = scmp.lt.s32.totalorder %s3854_s24, 3 }
   0x4   : > { %p240_p2 = pnand %p2895_p0, %p239_p1 }
   0x5   : > { %v3720_v0 = vld [vmem:[%s5007_s1 + $0x100] sm:$0xff] (!%p240_p2)   ;;  %v3723_v3 = vld [vmem:[%s5007_s1 + $0x108] sm:$0xff] (!%p240_p2)   ;;  %v3726_v6 = vld [vmem:[%s5007_s1 + $0x110] sm:$0xff] (!%p240_p2)   ;;  %s2896_s17 = sshll.u32 (!%p240_p2), %s3905_s25, 4  ;;  %vm3857_vm2 = vmmov (!%p240_p2), 0   ;;  %vm2752_vm9 = vcmask (!%p240_p2), 1041409  }
   0x6   : > { %243 = sbr.rel (%p240_p2) target bundleno = 916 (0x394), region = 48  ;;  %v3721_v1 = vld [vmem:[%s5007_s1 + $0x140] sm:$0xff] (!%p240_p2)   ;;  %3152 = vmatprep.subr.bf16.mxu0 (!%p240_p2), %v3720_v0  ;;  %v3724_v4 = vld [vmem:[%s5007_s1 + $0x148] sm:$0xff] (!%p240_p2)   ;;  %v3727_v7 = vld [vmem:[%s5007_s1 + $0x150] sm:$0xff] (!%p240_p2)   ;;  %p272_p3 = scmp.lt.s32.totalorder (!%p240_p2), %s2896_s17, 31  ;;  %vm2754_vm12 = vcmask (!%p240_p2), 1042434  }
   0x7   : > { %v3722_v2 = vld [vmem:[%s5007_s1 + $0xc0] sm:$0xff] (!%p240_p2)   ;;  %3457 = vmatprep.subr.bf16.mxu1 (!%p240_p2), %v3721_v1  ;;  %v3725_v5 = vld [vmem:[%s5007_s1 + $0xc8] sm:$0xff] (!%p240_p2)   ;;  %v3728_v8 = vld [vmem:[%s5007_s1 + $0xd0] sm:$0xff] (!%p240_p2)   ;;  %vm2756_vm13 = vcmask (!%p240_p2), 1043459   ;;  %vm2758_vm14 = vcmask (!%p240_p2), 1044484   ;;  %vm2760_vm15 = vcmask (!%p240_p2), 1045509  }
   0x8   : > { %3153 = vmatpush3.bf16.msra.mxu0 (!%p240_p2), %v3722_v2  ;;  %3458 = vmatpush3.bf16.msra.mxu1 (!%p240_p2), %v3721_v1  ;;  %v3729_v9 = vld [vmem:[%s5007_s1 + $0x118] sm:$0xff] (!%p240_p2)   ;;  %v3732_v12 = vld [vmem:[%s5007_s1 + $0x120] sm:$0xff] (!%p240_p2)   ;;  %v3735_v15 = vld [vmem:[%s5007_s1 + $0x128] sm:$0xff] (!%p240_p2)   ;;  %p278_p4 = scmp.lt.s32.totalorder (!%p240_p2), %s3905_s25, 1 }
   0x9   : > { %3154 = vmatprep.subr.bf16.mxu0 (!%p240_p2), %v3723_v3  ;;  %3459 = vmatprep.subr.bf16.mxu1 (!%p240_p2), %v3724_v4  ;;  %v3730_v10 = vld [vmem:[%s5007_s1 + $0x158] sm:$0xff] (!%p240_p2)   ;;  %v3733_v13 = vld [vmem:[%s5007_s1 + $0x160] sm:$0xff] (!%p240_p2)   ;;  %v3736_v16 = vld [vmem:[%s5007_s1 + $0x168] sm:$0xff] (!%p240_p2)  }
   0xa   : > { %v3731_v11 = vld [vmem:[%s5007_s1 + $0xd8] sm:$0xff] (!%p240_p2)   ;;  %v3734_v14 = vld [vmem:[%s5007_s1 + $0xe0] sm:$0xff] (!%p240_p2)   ;;  %v3737_v17 = vld [vmem:[%s5007_s1 + $0xe8] sm:$0xff] (!%p240_p2)  }
   0xb   : > { %v3738_v18 = vld [vmem:[%s5007_s1 + $0x130] sm:$0xff] (!%p240_p2)   ;;  %v3741_v21 = vld [vmem:[%s5007_s1 + $0x138] sm:$0xff] (!%p240_p2)   ;;  %v3749_v26 = vld [vmem:[%s5007_s1 + $0x1c0] sm:$0xff] (!%p240_p2)  }
   0xc   : > { %3155 = vmatpush3.bf16.msra.mxu0 (!%p240_p2), %v3725_v5  ;;  %3460 = vmatpush3.bf16.msra.mxu1 (!%p240_p2), %v3724_v4  ;;  %v3739_v19 = vld [vmem:[%s5007_s1 + $0x170] sm:$0xff] (!%p240_p2)   ;;  %v3742_v22 = vld [vmem:[%s5007_s1 + $0x178] sm:$0xff] (!%p240_p2)   ;;  %v3750_v28 = vld [vmem:[%s5007_s1 + $0x200] sm:$0xff] (!%p240_p2)  }
   0xd   : > { %3156 = vmatprep.subr.bf16.mxu0 %v3726_v6  ;;  %3461 = vmatprep.subr.bf16.mxu1 %v3727_v7  ;;  %s5029_s17 = smov (!%p272_p3, %s2896_s17), 31  ;;  %v3740_v20 = vld [vmem:[%s5007_s1 + $0xf0] sm:$0xff]   ;;  %v3743_v25 = vld [vmem:[%s5007_s1 + $0xf8] sm:$0xff]   ;;  %v3751_v30 = vld [vmem:[%s5007_s1 + $0x180] sm:$0xff]   ;;  %s5031_s25 = smov (!%p278_p4, %s3905_s25), 1 }
   0xe   : > { %s3708_s18 = smul.u32 12, %s5029_s17  ;;  %v3752_v31 = vld [vmem:[%s5007_s1 + $0x1c8] sm:$0xff]   ;;  %v3759_v35 = vld [vmem:[%s5007_s1 + $0x1d0] sm:$0xff]   ;;  %v3762_v40 = vld [vmem:[%s5007_s1 + $0x1d8] sm:$0xff]   ;;  %s2898_s8 = sshll.u32 %s5031_s25, 3 }
   0xf   : > { %v3753_v34 = vld [vmem:[%s5007_s1 + $0x188] sm:$0xff]   ;;  %v3761_v39 = vld [vmem:[%s5007_s1 + $0x190] sm:$0xff]   ;;  %v3763_v43 = vld [vmem:[%s5007_s1 + $0x198] sm:$0xff]   ;;  %s281_s13 = scalar_lea.vmem %s5013_s7, %s2898_s8 }
  0x10   : > { %3157 = vmatpush3.bf16.msra.mxu0 %v3728_v8  ;;  %3462 = vmatpush3.bf16.msra.mxu1 %v3727_v7  ;;  %s3973_s17 = scalar_lea.vmem %s5006_s0, %s3708_s18  ;;  %v3760_v37 = vld [vmem:[%s5007_s1 + $0x208] sm:$0xff]   ;;  %v3769_v44 = vld [vmem:[%s5007_s1 + $0x1e0] sm:$0xff]   ;;  %v3770_v46 = vld [vmem:[%s5007_s1 + $0x210] sm:$0xff]  }
  0x11   : > { %3158 = vmatprep.subr.bf16.mxu0 %v3729_v9  ;;  %3463 = vmatprep.subr.bf16.mxu1 %v3730_v10  ;;  %v3985_v23 = vld [vmem:[%s3973_s17 + $0x4] ss:$12 sps:$4 sm:$0xff]   ;;  %v3988_v24 = vld [vmem:[%s3973_s17 + $0x8] ss:$12 sps:$4 sm:$0xff]   ;;  %v3999_v27 = vld [vmem:[%s3973_s17] ss:$12 sps:$4 sm:$0xff]  }
  0x12   : > { %716 = vmatprep.mubr.bf16.mxu0 %v3985_v23  ;;  %3473 = vmatprep.mubr.bf16.mxu1 %v3988_v24  ;;  %v4005_v29 = vld [vmem:[%s3973_s17 + $0x20] ss:$12 sps:$4 sm:$0xff]   ;;  %v4014_v32 = vld [vmem:[%s3973_s17 + $0x1c] ss:$12 sps:$4 sm:$0xff]   ;;  %v4017_v33 = vld [vmem:[%s3973_s17 + $0x38] ss:$12 sps:$4 sm:$0xff]  }
  0x13   : > { %v4029_v36 = vld [vmem:[%s3973_s17 + $0x18] ss:$12 sps:$4 sm:$0xff]   ;;  %v4036_v38 = vld [vmem:[%s3973_s17 + $0x50] ss:$12 sps:$4 sm:$0xff]   ;;  %v4045_v41 = vld [vmem:[%s3973_s17 + $0x34] ss:$12 sps:$4 sm:$0xff]  }
  0x14   : > { %3159 = vmatpush3.bf16.msra.mxu0 %v3731_v11  ;;  %3464 = vmatpush3.bf16.msra.mxu1 %v3730_v10  ;;  %v4048_v42 = vld [vmem:[%s3973_s17 + $0x68] ss:$12 sps:$4 sm:$0xff]   ;;  %v4061_v45 = vld [vmem:[%s3973_s17 + $0x30] ss:$12 sps:$4 sm:$0xff]   ;;  %v4067_v47 = vld [vmem:[%s3973_s17 + $0x80] ss:$12 sps:$4 sm:$0xff]  }
  0x15   : > { %3160 = vmatprep.subr.bf16.mxu0 %v3732_v12  ;;  %3465 = vmatprep.subr.bf16.mxu1 %v3733_v13  ;;  %v3771_v48 = vld [vmem:[%s5007_s1 + $0x1a0] sm:$0xff]   ;;  %v3772_v49 = vld [vmem:[%s5007_s1 + $0x1e8] sm:$0xff]   ;;  %v3779_v54 = vld [vmem:[%s5007_s1 + $0x1f0] sm:$0xff]  }
  0x16   : > { %v4076_v50 = vld [vmem:[%s3973_s17 + $0x4c] ss:$12 sps:$4 sm:$0xff]   ;;  %v4089_v53 = vld [vmem:[%s3973_s17 + $0x48] ss:$12 sps:$4 sm:$0xff]   ;;  %v4098_v56 = vld [vmem:[%s3973_s17 + $0xb0] ss:$12 sps:$4 sm:$0xff]  }
  0x17   : > { %v4079_v51 = vld [vmem:[%s3973_s17 + $0x98] ss:$12 sps:$4 sm:$0xff]   ;;  %v3773_v52 = vld [vmem:[%s5007_s1 + $0x1a8] sm:$0xff]   ;;  %v3781_v57 = vld [vmem:[%s5007_s1 + $0x1b0] sm:$0xff]  }
  0x18   : > { %3161 = vmatpush3.bf16.msra.mxu0 %v3734_v14  ;;  %3466 = vmatpush3.bf16.msra.mxu1 %v3733_v13  ;;  %v3780_v55 = vld [vmem:[%s5007_s1 + $0x218] sm:$0xff]   ;;  %v4107_v59 = vld [vmem:[%s3973_s17 + $0x64] ss:$12 sps:$4 sm:$0xff]   ;;  %v3791_v62 = vld [vmem:[%s5007_s1 + $0x228] sm:$0xff]  }
  0x19   : > { %3162 = vmatprep.subr.bf16.mxu0 %v3735_v15  ;;  %3467 = vmatprep.subr.bf16.mxu1 %v3736_v16  ;;  %v3782_v58 = vld [vmem:[%s5007_s1 + $0x1f8] sm:$0xff]   ;;  %v3787_v60 = vld [vmem:[%s5007_s1 + $0x220] sm:$0xff]   ;;  %v3795_v1 = vld [vmem:[%s5007_s1 + $0x230] sm:$0xff]  }
  0x1a   : > { %v3783_v61 = vld [vmem:[%s5007_s1 + $0x1b8] sm:$0xff]   ;;  %v4123_v63 = vld [vmem:[%s3973_s17 + $0x60] ss:$12 sps:$4 sm:$0xff]   ;;  %v3809_v8 = vld [vmem:[%s5007_s1 + $0x90] sm:$0xff]  }
  0x1b   : > { %v4126_v0 = vld [vmem:[%s3973_s17 + $0x7c] ss:$12 sps:$4 sm:$0xff]   ;;  %v3800_v2 = vld [vmem:[%s5007_s1 + $0x80] sm:$0xff]   ;;  %v4167_v11 = vld [vmem:[%s3973_s17 + $0xac] ss:$12 sps:$4 sm:$0xff]  }
  0x1c   : > { %3163 = vmatpush3.bf16.msra.mxu0 %v3737_v17  ;;  %3468 = vmatpush3.bf16.msra.mxu1 %v3736_v16  ;;  %v4139_v3 = vld [vmem:[%s3973_s17 + $0x78] ss:$12 sps:$4 sm:$0xff]   ;;  %v4145_v5 = vld [vmem:[%s3973_s17 + $0x94] ss:$12 sps:$4 sm:$0xff]   ;;  %v3805_v6 = vld [vmem:[%s5007_s1 + $0x88] sm:$0xff]  }
  0x1d   : > { %3164 = vmatprep.subr.bf16.mxu0 %v3738_v18  ;;  %3469 = vmatprep.subr.bf16.mxu1 %v3739_v19  ;;  %v3799_v4 = vld [vmem:[%s5007_s1 + $0x238] sm:$0xff]   ;;  %v3801_v7 = vld [vmem:[%s5007_s1 + $0x40] sm:$0xff]   ;;  %v3818_v13 = vld [vmem:[%s5007_s1 + $0xa8] sm:$0xff]  }
  0x1e   : > { %v4161_v9 = vld [vmem:[%s3973_s17 + $0x90] ss:$12 sps:$4 sm:$0xff]   ;;  %v3815_v12 = vld [vmem:[%s5007_s1 + $0xa0] sm:$0xff]   ;;  %v4180_v14 = vld [vmem:[%s3973_s17 + $0xa8] ss:$12 sps:$4 sm:$0xff]  }
  0x1f   : > { %v3812_v10 = vld [vmem:[%s5007_s1 + $0x98] sm:$0xff]   ;;  %v3821_v15 = vld [vmem:[%s5007_s1 + $0xb0] sm:$0xff]   ;;  %v3802_v17 = vld [vmem:[%s5007_s1] sm:$0xff]  }
  0x20   : > { %3165 = vmatpush3.bf16.msra.mxu0 %v3740_v20  ;;  %3470 = vmatpush3.bf16.msra.mxu1 %v3739_v19  ;;  %v3823_v16 = vld [vmem:[%s5007_s1 + $0xb8] sm:$0xff]   ;;  %v3803_v18 = vld [vmem:[%s5007_s1 + $0x48] sm:$0xff]   ;;  %v3806_v20 = vld [vmem:[%s5007_s1 + $0x50] sm:$0xff]  }
  0x21   : > { %3166 = vmatprep.subr.bf16.mxu0 %v3741_v21  ;;  %3471 = vmatprep.subr.bf16.mxu1 %v3742_v22  ;;  %v3804_v19 = vld [vmem:[%s5007_s1 + $0x8] sm:$0xff]   ;;  %v3807_v21 = vld [vmem:[%s5007_s1 + $0x10] sm:$0xff]  }
  0x24   : > { %3167 = vmatpush3.bf16.msra.mxu0 %v3743_v25  ;;  %3472 = vmatpush3.bf16.msra.mxu1 %v3742_v22  ;;  %v3808_v22 = vld [vmem:[%s5007_s1 + $0x58] sm:$0xff]  }
  0x25   : > { %3232 = vmatprep.subr.bf16.mxu1 %v3749_v26  ;;  %3489 = vmatprep.subr.bf16.mxu0 %v3750_v28  ;;  %v3810_v25 = vld [vmem:[%s5007_s1 + $0x18] sm:$0xff]   ;;  %v3811_v26 = vld [vmem:[%s5007_s1 + $0x60] sm:$0xff]  }
  0x27   : > { %717 = vmatmul.mubr.bf16.vlgmr.msra.gmra.mrb[0].mxu0 %v3999_v27  ;;  %3474 = vmatmul.mubr.bf16.vlgmr.msra.gmra.mrb[0].mxu1 %v4005_v29 }
  0x28   : > { %3233 = vmatpush3.bf16.msra.mxu1 %v3751_v30  ;;  %3490 = vmatpush3.bf16.msra.mxu0 %v3750_v28  ;;  %v3813_v28 = vld [vmem:[%s5007_s1 + $0x20] sm:$0xff]   ;;  %v3814_v30 = vld [vmem:[%s5007_s1 + $0x68] sm:$0xff]  }
  0x29   : > { %3234 = vmatprep.subr.bf16.mxu1 %v3752_v31  ;;  %724 = vmatprep.mubr.bf16.mxu0 %v4014_v32  ;;  %v3816_v31 = vld [vmem:[%s5007_s1 + $0x28] sm:$0xff]  }
  0x2a   : > { %3477 = vmatprep.mubr.bf16.mxu1 %v4017_v33  ;;  %3491 = vmatprep.subr.bf16.mxu0 %v3760_v37 }
  0x2c   : > { %3235 = vmatpush3.bf16.msra.mxu1 %v3753_v34  ;;  %3492 = vmatpush3.bf16.msra.mxu0 %v3760_v37  ;;  %v3817_v34 = vld [vmem:[%s5007_s1 + $0x70] sm:$0xff]   ;;  %v3820_v37 = vld [vmem:[%s5007_s1 + $0x78] sm:$0xff]  }
  0x2d   : > { %3236 = vmatprep.subr.bf16.mxu1 %v3759_v35  ;;  %3493 = vmatprep.subr.bf16.mxu0 %v3770_v46  ;;  %v3819_v35 = vld [vmem:[%s5007_s1 + $0x30] sm:$0xff]  }
  0x2f   : > { %725 = vmatmul.mubr.bf16.gmra.mrb[4].mxu0 %v4029_v36  ;;  %3478 = vmatmul.mubr.bf16.gmra.mrb[4].mxu1 %v4036_v38 }
  0x30   : > { %3237 = vmatpush3.bf16.msra.mxu1 %v3761_v39  ;;  %732 = vmatprep.mubr.bf16.mxu0 %v4045_v41  ;;  %v3822_v39 = vld [vmem:[%s5007_s1 + $0x38] sm:$0xff]  }
  0x31   : > { %3238 = vmatprep.subr.bf16.mxu1 %v3762_v40  ;;  %3481 = vmatprep.mubr.bf16.mxu1 %v4048_v42  ;;  %v3832_v40 = vld [vmem:[%s5009_s3 + $0x60] sm:$0xff]  }
  0x32   : > { %3494 = vmatpush3.bf16.msra.mxu0 %v3770_v46  ;;  %v1281_v46 = vlaneseq }
  0x33   : > { %3495 = vmatprep.subr.bf16.mxu0 %v3780_v55 }
  0x34   : > { %3239 = vmatpush3.bf16.msra.mxu1 %v3763_v43  ;;  %v3835_v43 = vld [vmem:[%s5009_s3 + $0xa8] sm:$0xff]  }
  0x35   : > { %3240 = vmatprep.subr.bf16.mxu1 %v3769_v44  ;;  %v3836_v44 = vld [vmem:[%s5009_s3 + $0x70] sm:$0xff]  }
  0x36   : > { %3496 = vmatpush3.bf16.msra.mxu0 %v3780_v55  ;;  %v3839_v55 = vld [vmem:[%s5009_s3 + $0xb8] sm:$0xff]  }
  0x37   : > { %733 = vmatmul.mubr.bf16.gmra.mrb[8].mxu0 %v4061_v45  ;;  %3482 = vmatmul.mubr.bf16.gmra.mrb[8].mxu1 %v4067_v47 }
  0x38   : > { %3241 = vmatpush3.bf16.msra.mxu1 %v3771_v48  ;;  %740 = vmatprep.mubr.bf16.mxu0 %v4076_v50 }
  0x39   : > { %3242 = vmatprep.subr.bf16.mxu1 %v3772_v49  ;;  %3485 = vmatprep.mubr.bf16.mxu1 %v4079_v51 }
  0x3a   : > { %3497 = vmatprep.subr.bf16.mxu0 %v3787_v60 }
  0x3b   : > { %3498 = vmatpush3.bf16.msra.mxu0 %v3787_v60 }
  0x3c   : > { %3243 = vmatpush3.bf16.msra.mxu1 %v3773_v52  ;;  %3499 = vmatprep.subr.bf16.mxu0 %v3791_v62 }
  0x3d   : > { %3244 = vmatprep.subr.bf16.mxu1 %v3779_v54  ;;  %v3838_v54 = vld [vmem:[%s5009_s3 + $0x78] sm:$0xff]  }
  0x3f   : > { %741 = vmatmul.mubr.bf16.gmra.mrb[12].mxu0 %v4089_v53  ;;  %3486 = vmatmul.mubr.bf16.gmra.mrb[12].mxu1 %v4098_v56 }
  0x40   : > { %3245 = vmatpush3.bf16.msra.mxu1 %v3781_v57  ;;  %748 = vmatprep.mubr.bf16.mxu0 %v4107_v59 }
  0x41   : > { %3246 = vmatprep.subr.bf16.mxu1 %v3782_v58  ;;  %1103 = vmatprep.mubr.bf16.mxu1 %v3985_v23  ;;  %v4323_v58 = vshrl.u32 %v1281_v46, 7 }
  0x42   : > { %3500 = vmatpush3.bf16.msra.mxu0 %v3791_v62 }
  0x43   : > { %3501 = vmatprep.subr.bf16.mxu0 %v3795_v1  ;;  %vm1283_vm0 = vcmp.lt.s32.totalorder %v4323_v58, 7  ;;  %vm1654_vm1 = vcmp.lt.s32.totalorder %v4323_v58, 6 }
  0x44   : > { %3247 = vmatpush3.bf16.msra.mxu1 %v3783_v61 }
  0x45   : > { %3521 = vmatprep.subr.bf16.mxu1 %v3800_v2 }
  0x46   : > { %3502 = vmatpush3.bf16.msra.mxu0 %v3795_v1 }
  0x47   : > { %749 = vmatmul.mubr.bf16.gmra.mrb[16].mxu0 %v4123_v63  ;;  %1104 = vmatmul.mubr.bf16.vlgmr.msra.gmra.mrb[16].mxu1 %v3999_v27 }
  0x48   : > { %756 = vmatprep.mubr.bf16.mxu0 %v4126_v0  ;;  %1111 = vmatprep.mubr.bf16.mxu1 %v4014_v32 }
  0x49   : > { %3522 = vmatpush3.bf16.msra.mxu1 %v3800_v2  ;;  %3503 = vmatprep.subr.bf16.mxu0 %v3799_v4 }
  0x4a   : > { %3523 = vmatprep.subr.bf16.mxu1 %v3805_v6  ;;  %3504 = vmatpush3.bf16.msra.mxu0 %v3799_v4 }
  0x4b   : > { %3312 = vmatprep.subr.bf16.mxu0 %v3801_v7 }
  0x4d   : > { %3524 = vmatpush3.bf16.msra.mxu1 %v3805_v6 }
  0x4e   : > { %3525 = vmatprep.subr.bf16.mxu1 %v3809_v8 }
  0x4f   : > { %757 = vmatmul.mubr.bf16.gmra.mrb[20].mxu0 %v4139_v3  ;;  %1112 = vmatmul.mubr.bf16.gmra.mrb[20].mxu1 %v4029_v36 }
  0x50   : > { %764 = vmatprep.mubr.bf16.mxu0 %v4145_v5  ;;  %1119 = vmatprep.mubr.bf16.mxu1 %v4045_v41 }
  0x51   : > { %3526 = vmatpush3.bf16.msra.mxu1 %v3809_v8 }
  0x52   : > { %3527 = vmatprep.subr.bf16.mxu1 %v3812_v10 }
  0x55   : > { %3528 = vmatpush3.bf16.msra.mxu1 %v3812_v10 }
  0x56   : > { %3529 = vmatprep.subr.bf16.mxu1 %v3815_v12 }
  0x57   : > { %765 = vmatmul.mubr.bf16.gmra.mrb[24].mxu0 %v4161_v9  ;;  %1120 = vmatmul.mubr.bf16.gmra.mrb[24].mxu1 %v4061_v45 }
  0x58   : > { %772 = vmatprep.mubr.bf16.mxu0 %v4167_v11  ;;  %1127 = vmatprep.mubr.bf16.mxu1 %v4076_v50 }
  0x59   : > { %3530 = vmatpush3.bf16.msra.mxu1 %v3815_v12 }
  0x5a   : > { %3531 = vmatprep.subr.bf16.mxu1 %v3818_v13 }
  0x5d   : > { %3532 = vmatpush3.bf16.msra.mxu1 %v3818_v13 }
  0x5e   : > { %3533 = vmatprep.subr.bf16.mxu1 %v3821_v15 }
  0x5f   : > { %773 = vmatmul.mubr.bf16.gmra.mrb[28].mxu0 %v4180_v14  ;;  %1128 = vmatmul.mubr.bf16.gmra.mrb[28].mxu1 %v4089_v53 }
  0x60   : > { %1135 = vmatprep.mubr.bf16.mxu1 %v4107_v59  ;;  %3505 = vmatprep.mubr.bf16.mxu0 %v3988_v24 }
  0x61   : > { %3534 = vmatpush3.bf16.msra.mxu1 %v3821_v15 }
  0x62   : > { %3535 = vmatprep.subr.bf16.mxu1 %v3823_v16 }
  0x65   : > { %3536 = vmatpush3.bf16.msra.mxu1 %v3823_v16 }
  0x67   : > { %1136 = vmatmul.mubr.bf16.gmra.mrb[32].mxu1 %v4123_v63  ;;  %3506 = vmatmul.mubr.bf16.vlgmr.msra.gmra.mrb[32].mxu0 %v4005_v29 }
  0x68   : > { %3313 = vmatpush3.bf16.msra.mxu0 %v3802_v17  ;;  %1143 = vmatprep.mubr.bf16.mxu1 %v4126_v0 }
  0x69   : > { %3314 = vmatprep.subr.bf16.mxu0 %v3803_v18  ;;  %3509 = vmatprep.mubr.bf16.mxu0 %v4017_v33 }
  0x6c   : > { %3315 = vmatpush3.bf16.msra.mxu0 %v3804_v19 }
  0x6d   : > { %3316 = vmatprep.subr.bf16.mxu0 %v3806_v20 }
  0x6f   : > { %1144 = vmatmul.mubr.bf16.gmra.mrb[36].mxu1 %v4139_v3  ;;  %3510 = vmatmul.mubr.bf16.gmra.mrb[36].mxu0 %v4036_v38 }
  0x70   : > { %3317 = vmatpush3.bf16.msra.mxu0 %v3807_v21  ;;  %1151 = vmatprep.mubr.bf16.mxu1 %v4145_v5 }
  0x71   : > { %3318 = vmatprep.subr.bf16.mxu0 %v3808_v22  ;;  %3513 = vmatprep.mubr.bf16.mxu0 %v4048_v42 }
  0x74   : > { %3319 = vmatpush3.bf16.msra.mxu0 %v3810_v25 }
  0x75   : > { %3320 = vmatprep.subr.bf16.mxu0 %v3811_v26 }
  0x77   : > { %1152 = vmatmul.mubr.bf16.gmra.mrb[40].mxu1 %v4161_v9  ;;  %3514 = vmatmul.mubr.bf16.gmra.mrb[40].mxu0 %v4067_v47 }
  0x78   : > { %3321 = vmatpush3.bf16.msra.mxu0 %v3813_v28  ;;  %1159 = vmatprep.mubr.bf16.mxu1 %v4167_v11 }
  0x79   : > { %3322 = vmatprep.subr.bf16.mxu0 %v3814_v30  ;;  %3517 = vmatprep.mubr.bf16.mxu0 %v4079_v51 }
  0x7c   : > { %3323 = vmatpush3.bf16.msra.mxu0 %v3816_v31 }
  0x7d   : > { %3324 = vmatprep.subr.bf16.mxu0 %v3817_v34 }
  0x7f   : > { %1160 = vmatmul.mubr.bf16.gmra.mrb[44].mxu1 %v4180_v14  ;;  %3518 = vmatmul.mubr.bf16.gmra.mrb[44].mxu0 %v4098_v56 }
  0x80   : > { %3325 = vmatpush3.bf16.msra.mxu0 %v3819_v35  ;;  %1476 = vmatprep.mubr.bf16.mxu0 %v3985_v23  ;;  %v3824_v23 = vld [vmem:[%s5009_s3 + $0x40] sm:$0xff]  }
  0x81   : > { %3326 = vmatprep.subr.bf16.mxu0 %v3820_v37  ;;  %3537 = vmatprep.mubr.bf16.mxu1 %v3988_v24  ;;  %v3825_v24 = vld [vmem:[%s5009_s3 + $0x80] sm:$0xff]  }
  0x82   : > { %3553 = vmatprep.subr.bf16.mxu1 %v3824_v23 }
  0x84   : > { %3327 = vmatpush3.bf16.msra.mxu0 %v3822_v39 }
  0x85   : > { %3585 = vmatprep.subr.bf16.mxu0 %v3825_v24 }
  0x87   : > { %1477 = vmatmul.mubr.bf16.vlgmr.msra.gmra.mrb[48].mxu0 %v3999_v27  ;;  %3538 = vmatmul.mubr.bf16.vlgmr.msra.gmra.mrb[48].mxu1 %v4005_v29  ;;  %v3826_v27 = vld [vmem:[%s5009_s3 + $0x48] sm:$0xff]  }
  0x88   : > { %1484 = vmatprep.mubr.bf16.mxu0 %v4014_v32  ;;  %3541 = vmatprep.mubr.bf16.mxu1 %v4017_v33  ;;  %v3827_v29 = vld [vmem:[%s5009_s3 + $0x88] sm:$0xff]   ;;  %v3828_v32 = vld [vmem:[%s5009_s3 + $0x50] sm:$0xff]  }
  0x89   : > { %3554 = vmatpush3.bf16.msra.mxu1 %v3824_v23  ;;  %3586 = vmatpush3.bf16.msra.mxu0 %v3825_v24  ;;  %v3829_v33 = vld [vmem:[%s5009_s3 + $0x90] sm:$0xff]  }
  0x8a   : > { %3555 = vmatprep.subr.bf16.mxu1 %v3826_v27  ;;  %3587 = vmatprep.subr.bf16.mxu0 %v3827_v29 }
  0x8d   : > { %3556 = vmatpush3.bf16.msra.mxu1 %v3826_v27  ;;  %3588 = vmatpush3.bf16.msra.mxu0 %v3827_v29 }
  0x8e   : > { %3557 = vmatprep.subr.bf16.mxu1 %v3828_v32  ;;  %3589 = vmatprep.subr.bf16.mxu0 %v3829_v33 }
  0x8f   : > { %1485 = vmatmul.mubr.bf16.gmra.mrb[52].mxu0 %v4029_v36  ;;  %3542 = vmatmul.mubr.bf16.gmra.mrb[52].mxu1 %v4036_v38  ;;  %v3830_v36 = vld [vmem:[%s5009_s3 + $0x58] sm:$0xff]  }
  0x90   : > { %1492 = vmatprep.mubr.bf16.mxu0 %v4045_v41  ;;  %3545 = vmatprep.mubr.bf16.mxu1 %v4048_v42  ;;  %v3831_v38 = vld [vmem:[%s5009_s3 + $0x98] sm:$0xff]   ;;  %v3833_v41 = vld [vmem:[%s5009_s3 + $0xa0] sm:$0xff]   ;;  %v3834_v42 = vld [vmem:[%s5009_s3 + $0x68] sm:$0xff]  }
  0x91   : > { %3558 = vmatpush3.bf16.msra.mxu1 %v3828_v32  ;;  %3590 = vmatpush3.bf16.msra.mxu0 %v3829_v33 }
  0x92   : > { %3559 = vmatprep.subr.bf16.mxu1 %v3830_v36  ;;  %3591 = vmatprep.subr.bf16.mxu0 %v3831_v38 }
  0x95   : > { %3560 = vmatpush3.bf16.msra.mxu1 %v3830_v36  ;;  %3592 = vmatpush3.bf16.msra.mxu0 %v3831_v38 }
  0x96   : > { %3561 = vmatprep.subr.bf16.mxu1 %v3832_v40  ;;  %3593 = vmatprep.subr.bf16.mxu0 %v3833_v41 }
  0x97   : > { %1493 = vmatmul.mubr.bf16.gmra.mrb[56].mxu0 %v4061_v45  ;;  %3546 = vmatmul.mubr.bf16.gmra.mrb[56].mxu1 %v4067_v47  ;;  %v3837_v45 = vld [vmem:[%s5009_s3 + $0xb0] sm:$0xff]  }
  0x98   : > { %1500 = vmatprep.mubr.bf16.mxu0 %v4076_v50  ;;  %3549 = vmatprep.mubr.bf16.mxu1 %v4079_v51 }
  0x99   : > { %3562 = vmatpush3.bf16.msra.mxu1 %v3832_v40  ;;  %3594 = vmatpush3.bf16.msra.mxu0 %v3833_v41  ;;  %v4362_v40 = vld [vmem:[%s5009_s3] sm:$0xff]  }
  0x9a   : > { %3563 = vmatprep.subr.bf16.mxu1 %v3834_v42  ;;  %3595 = vmatprep.subr.bf16.mxu0 %v3835_v43 }
  0x9d   : > { %3564 = vmatpush3.bf16.msra.mxu1 %v3834_v42  ;;  %3596 = vmatpush3.bf16.msra.mxu0 %v3835_v43 }
  0x9e   : > { %3565 = vmatprep.subr.bf16.mxu1 %v3836_v44  ;;  %3597 = vmatprep.subr.bf16.mxu0 %v3837_v45 }
  0x9f   : > { %1501 = vmatmul.mubr.bf16.gmra.mrb[60].mxu0 %v4089_v53  ;;  %3550 = vmatmul.mubr.bf16.gmra.mrb[60].mxu1 %v4098_v56 }
  0xa0   : > { %1508 = vmatprep.mubr.bf16.mxu0 %v4107_v59 }
  0xa1   : > { %3566 = vmatpush3.bf16.msra.mxu1 %v3836_v44  ;;  %3598 = vmatpush3.bf16.msra.mxu0 %v3837_v45 }
  0xa2   : > { %3567 = vmatprep.subr.bf16.mxu1 %v3838_v54  ;;  %3599 = vmatprep.subr.bf16.mxu0 %v3839_v55 }
  0xa5   : > { %3568 = vmatpush3.bf16.msra.mxu1 %v3838_v54  ;;  %3600 = vmatpush3.bf16.msra.mxu0 %v3839_v55 }
  0xa6   : > { %3617 = vmatprep.subr.bf16.mxu1 %v4362_v40 }
  0xa7   : > { %1509 = vmatmul.mubr.bf16.gmra.mrb[64].mxu0 %v4123_v63 }
  0xa8   : > { %1516 = vmatprep.mubr.bf16.mxu0 %v4126_v0 }
  0xaf   : > { %1517 = vmatmul.mubr.bf16.gmra.mrb[68].mxu0 %v4139_v3 }
  0xb0   : > { %1524 = vmatprep.mubr.bf16.mxu0 %v4145_v5 }
  0xb7   : > { %1525 = vmatmul.mubr.bf16.gmra.mrb[72].mxu0 %v4161_v9 }
  0xb8   : > { %1532 = vmatprep.mubr.bf16.mxu0 %v4167_v11 }
  0xbf   : > { %1533 = vmatmul.mubr.bf16.gmra.mrb[76].mxu0 %v4180_v14 }
  0xfa   : > { %v3168_v47 = vpop.f32.mrb[0].mxu0  ;;  %v3475_v48 = vpop.f32.mrb[0].mxu1 }
  0xfb   : > { %v3169_v49 = vpop.f32.mrb[1].mxu0  ;;  %v815_v50 = vpop.f32.mrb[1].mxu1 }
  0xfc   : > { %v3170_v51 = vadd.f32 %v3169_v49, %v3168_v47  ;;  %v3171_v52 = vpop.f32.mrb[2].mxu0  ;;  %v3476_v53 = vpop.f32.mrb[2].mxu1 }
  0xfd   : > { %v3172_v56 = vpop.f32.mrb[3].mxu0  ;;  %v818_v57 = vpop.f32.mrb[3].mxu1 }
  0xfe   : > { %v3173_v59 = vadd.f32 %v3172_v56, %v3171_v52  ;;  %v4325_v60 = vadd.f32 %v3170_v51, %v815_v50 }
 0x100   : > { %v819_v61 = vadd.f32 %v3173_v59, %v818_v57  ;;  %v1265_v62 = vrot.slane %v4325_v60, 1 }
 0x102   : > { %v1266_v63 = vrot.slane %v819_v61, 1  ;;  %v3174_v0 = vpop.f32.mrb[4].mxu0  ;;  %v3479_v1 = vpop.f32.mrb[4].mxu1 }
 0x103   : > { %v3175_v2 = vpop.f32.mrb[5].mxu0  ;;  %v831_v3 = vpop.f32.mrb[5].mxu1 }
 0x104   : > { %v3176_v4 = vadd.f32 %v3175_v2, %v3174_v0  ;;  %v3177_v5 = vpop.f32.mrb[6].mxu0  ;;  %v3480_v6 = vpop.f32.mrb[6].mxu1  ;;  %v4333_v7 = vsel %vm1283_vm0, %v1265_v62, %v1266_v63 }
 0x105   : > { %v3178_v8 = vpop.f32.mrb[7].mxu0  ;;  %v834_v9 = vpop.f32.mrb[7].mxu1 }
 0x106   : > { %v824_v10 = vadd.f32 %v3475_v48, %v3176_v4  ;;  %v3179_v11 = vadd.f32 %v3178_v8, %v3177_v5 }
 0x108   : > { %v1267_v12 = vrot.slane %v824_v10, 1  ;;  %v827_v13 = vadd.f32 %v3476_v53, %v3179_v11 }
 0x10a   : > { %v1268_v14 = vrot.slane %v827_v13, 1  ;;  %v3180_v15 = vpop.f32.mrb[8].mxu0  ;;  %v4335_v16 = vpop.f32.mrb[8].mxu1  ;;  %v4339_v17 = vsel %vm1283_vm0, %v1266_v63, %v1267_v12 }
 0x10b   : > { %v3181_v18 = vpop.f32.mrb[9].mxu0  ;;  %v847_v19 = vpop.f32.mrb[9].mxu1 }
 0x10c   : > { %v3182_v20 = vadd.f32 %v3181_v18, %v3180_v15  ;;  %v3183_v21 = vpop.f32.mrb[10].mxu0  ;;  %v3484_v22 = vpop.f32.mrb[10].mxu1  ;;  %v4343_v25 = vsel %vm1283_vm0, %v1267_v12, %v1268_v14 }
 0x10d   : > { %v3184_v26 = vpop.f32.mrb[11].mxu0  ;;  %v850_v28 = vpop.f32.mrb[11].mxu1 }
 0x10e   : > { %v3185_v30 = vadd.f32 %v3184_v26, %v3183_v21  ;;  %v832_v31 = vadd.f32 %v3182_v20, %v831_v3 }
 0x110   : > { %v1269_v34 = vrot.slane %v832_v31, 1  ;;  %v835_v35 = vadd.f32 %v3185_v30, %v834_v9 }
 0x112   : > { %v1270_v37 = vrot.slane %v835_v35, 1  ;;  %v3186_v39 = vpop.f32.mrb[12].mxu0  ;;  %v4345_v23 = vpop.f32.mrb[12].mxu1  ;;  %v4349_v24 = vsel %vm1283_vm0, %v1268_v14, %v1269_v34 }
 0x113   : > { %v3187_v27 = vpop.f32.mrb[13].mxu0  ;;  %v4351_v29 = vpop.f32.mrb[13].mxu1 }
 0x114   : > { %v3188_v32 = vadd.f32 %v3187_v27, %v3186_v39  ;;  %v3189_v33 = vpop.f32.mrb[14].mxu0  ;;  %v4353_v36 = vpop.f32.mrb[14].mxu1  ;;  %v4357_v38 = vsel %vm1283_vm0, %v1269_v34, %v1270_v37 }
 0x115   : > { %v3190_v41 = vpop.f32.mrb[15].mxu0  ;;  %v866_v42 = vpop.f32.mrb[15].mxu1 }
 0x116   : > { %v840_v43 = vadd.f32 %v3479_v1, %v3188_v32  ;;  %v3191_v44 = vadd.f32 %v3190_v41, %v3189_v33 }
 0x118   : > { %v1271_v45 = vrot.slane %v840_v43, 1  ;;  %v843_v46 = vadd.f32 %v3480_v6, %v3191_v44 }
 0x11a   : > { %v1272_v47 = vrot.slane %v843_v46, 1  ;;  %v3192_v48 = vpop.f32.mrb[16].mxu0  ;;  %v3248_v49 = vpop.f32.mrb[16].mxu1  ;;  %v4367_v50 = vsel %vm1283_vm0, %v1270_v37, %v1271_v45 }
 0x11b   : > { %v3193_v51 = vpop.f32.mrb[17].mxu0  ;;  %v3249_v52 = vpop.f32.mrb[17].mxu1 }
 0x11c   : > { %v3194_v53 = vadd.f32 %v3193_v51, %v3192_v48  ;;  %v3195_v54 = vpop.f32.mrb[18].mxu0  ;;  %v4369_v55 = vadd.f32 %v3249_v52, %v3248_v49  ;;  %v3251_v56 = vpop.f32.mrb[18].mxu1  ;;  %v4373_v57 = vsel %vm1283_vm0, %v1271_v45, %v1272_v47 }
 0x11d   : > { %v3196_v59 = vpop.f32.mrb[19].mxu0  ;;  %v3252_v61 = vpop.f32.mrb[19].mxu1 }
 0x11e   : > { %v3197_v63 = vadd.f32 %v3196_v59, %v3195_v54  ;;  %v848_v0 = vadd.f32 %v3194_v53, %v847_v19  ;;  %v4375_v1 = vadd.f32 %v3252_v61, %v3251_v56 }
 0x120   : > { %v1273_v2 = vrot.slane %v848_v0, 1  ;;  %v851_v3 = vadd.f32 %v3197_v63, %v850_v28 }
 0x122   : > { %v1274_v4 = vrot.slane %v851_v3, 1  ;;  %v3198_v5 = vpop.f32.mrb[20].mxu0  ;;  %v3254_v6 = vpop.f32.mrb[20].mxu1  ;;  %v4379_v8 = vsel %vm1283_vm0, %v1272_v47, %v1273_v2 }
 0x123   : > { %v3199_v9 = vpop.f32.mrb[21].mxu0  ;;  %v3255_v10 = vpop.f32.mrb[21].mxu1 }
 0x124   : > { %v3200_v11 = vadd.f32 %v3199_v9, %v3198_v5  ;;  %v3201_v12 = vpop.f32.mrb[22].mxu0  ;;  %v3256_v13 = vadd.f32 %v3255_v10, %v3254_v6  ;;  %v3257_v14 = vpop.f32.mrb[22].mxu1  ;;  %v4383_v15 = vsel %vm1283_vm0, %v1273_v2, %v1274_v4 }
 0x125   : > { %v3202_v18 = vpop.f32.mrb[23].mxu0  ;;  %v3258_v19 = vpop.f32.mrb[23].mxu1 }
 0x126   : > { %v856_v20 = vadd.f32 %v4335_v16, %v3200_v11  ;;  %v3203_v21 = vadd.f32 %v3202_v18, %v3201_v12  ;;  %v3259_v26 = vadd.f32 %v3258_v19, %v3257_v14 }
 0x128   : > { %v1275_v28 = vrot.slane %v856_v20, 1  ;;  %v859_v30 = vadd.f32 %v3484_v22, %v3203_v21 }
 0x12a   : > { %v1276_v31 = vrot.slane %v859_v30, 1  ;;  %v3204_v34 = vpop.f32.mrb[24].mxu0  ;;  %v3260_v35 = vpop.f32.mrb[24].mxu1  ;;  %v4388_v37 = vsel %vm1283_vm0, %v1274_v4, %v1275_v28 }
 0x12b   : > { %v3205_v39 = vpop.f32.mrb[25].mxu0  ;;  %v3261_v27 = vpop.f32.mrb[25].mxu1 }
 0x12c   : > { %v3206_v32 = vadd.f32 %v3205_v39, %v3204_v34  ;;  %v3207_v33 = vpop.f32.mrb[26].mxu0  ;;  %v3262_v41 = vadd.f32 %v3261_v27, %v3260_v35  ;;  %v3263_v43 = vpop.f32.mrb[26].mxu1  ;;  %v4392_v16 = vsel %vm1283_vm0, %v1275_v28, %v1276_v31 }
 0x12d   : > { %v3208_v44 = vpop.f32.mrb[27].mxu0  ;;  %v3264_v45 = vpop.f32.mrb[27].mxu1 }
 0x12e   : > { %v3209_v22 = vadd.f32 %v3208_v44, %v3207_v33  ;;  %v864_v46 = vadd.f32 %v3206_v32, %v4351_v29  ;;  %v3265_v47 = vadd.f32 %v3264_v45, %v3263_v43 }
 0x130   : > { %v1277_v48 = vrot.slane %v864_v46, 1  ;;  %v867_v49 = vadd.f32 %v3209_v22, %v866_v42 }
 0x132   : > { %v1278_v51 = vrot.slane %v867_v49, 1  ;;  %v3210_v52 = vpop.f32.mrb[28].mxu0  ;;  %v3266_v53 = vpop.f32.mrb[28].mxu1  ;;  %v4397_v54 = vsel %vm1283_vm0, %v1276_v31, %v1277_v48 }
 0x133   : > { %v3211_v56 = vpop.f32.mrb[29].mxu0  ;;  %v3267_v59 = vpop.f32.mrb[29].mxu1 }
 0x134   : > { %v3212_v61 = vadd.f32 %v3211_v56, %v3210_v52  ;;  %v3213_v63 = vpop.f32.mrb[30].mxu0  ;;  %v3268_v0 = vadd.f32 %v3267_v59, %v3266_v53  ;;  %v3269_v2 = vpop.f32.mrb[30].mxu1  ;;  %v4401_v3 = vsel %vm1283_vm0, %v1277_v48, %v1278_v51 }
 0x135   : > { %v3214_v29 = vpop.f32.mrb[31].mxu0  ;;  %v3270_v4 = vpop.f32.mrb[31].mxu1 }
 0x136   : > { %v872_v42 = vadd.f32 %v4345_v23, %v3212_v61  ;;  %v3215_v5 = vadd.f32 %v3214_v29, %v3213_v63  ;;  %v3271_v6 = vadd.f32 %v3270_v4, %v3269_v2 }
 0x138   : > { %v1279_v9 = vrot.slane %v872_v42, 1  ;;  %v875_v10 = vadd.f32 %v4353_v36, %v3215_v5 }
 0x13a   : > { %v1280_v11 = vrot.slane %v875_v10, 1  ;;  %v3507_v12 = vpop.f32.mrb[32].mxu0  ;;  %v3272_v14 = vpop.f32.mrb[32].mxu1  ;;  %v4407_v18 = vsel %vm1283_vm0, %v1278_v51, %v1279_v9 }
 0x13b   : > { %v1211_v19 = vadd.f32 %v3507_v12, %v3256_v13  ;;  %v1202_v20 = vpop.f32.mrb[33].mxu0  ;;  %v3273_v21 = vpop.f32.mrb[33].mxu1 }
 0x13c   : > { %v4410_v28 = vadd.f32 %v4369_v55, %v1202_v20  ;;  %v3508_v30 = vpop.f32.mrb[34].mxu0  ;;  %v3274_v23 = vadd.f32 %v3273_v21, %v3272_v14  ;;  %v3275_v31 = vpop.f32.mrb[34].mxu1  ;;  %v4414_v34 = vsel %vm1283_vm0, %v1279_v9, %v1280_v11  ;;  %v4420_v36 = vsel %vm1283_vm0, %v1280_v11, %v1265_v62 }
 0x13d   : > { %v1214_v35 = vadd.f32 %v3508_v30, %v3259_v26  ;;  %v1205_v13 = vpop.f32.mrb[35].mxu0  ;;  %v3276_v39 = vpop.f32.mrb[35].mxu1  ;;  %v1640_v32 = vrot.slane %v1211_v19, 2 }
 0x13e   : > { %v1206_v55 = vadd.f32 %v4375_v1, %v1205_v13  ;;  %v3277_v27 = vadd.f32 %v3276_v39, %v3275_v31  ;;  %v1638_v43 = vrot.slane %v4410_v28, 2 }
 0x13f   : > { %v1641_v33 = vrot.slane %v1214_v35, 2 }
 0x140   : > { %v1639_v44 = vrot.slane %v1206_v55, 2 }
 0x141   : > { %v4427_v60 = vsel %vm1654_vm1, %v1640_v32, %v1641_v33 }
 0x142   : > { %v3511_v45 = vpop.f32.mrb[36].mxu0  ;;  %v3278_v62 = vpop.f32.mrb[36].mxu1  ;;  %v4433_v26 = vsel %vm1654_vm1, %v1638_v43, %v1639_v44  ;;  %v4437_v1 = vsel %vm1654_vm1, %v1639_v44, %v1640_v32 }
 0x143   : > { %v1227_v22 = vadd.f32 %v3511_v45, %v3268_v0  ;;  %v1218_v46 = vpop.f32.mrb[37].mxu0  ;;  %v3279_v48 = vpop.f32.mrb[37].mxu1 }
 0x144   : > { %v1219_v49 = vadd.f32 %v3262_v41, %v1218_v46  ;;  %v3512_v51 = vpop.f32.mrb[38].mxu0  ;;  %v3280_v52 = vadd.f32 %v3279_v48, %v3278_v62  ;;  %v3281_v53 = vpop.f32.mrb[38].mxu1 }
 0x145   : > { %v1230_v56 = vadd.f32 %v3512_v51, %v3271_v6  ;;  %v1221_v59 = vpop.f32.mrb[39].mxu0  ;;  %v3282_v61 = vpop.f32.mrb[39].mxu1  ;;  %v1644_v4 = vrot.slane %v1227_v22, 2 }
 0x146   : > { %v1642_v63 = vrot.slane %v1219_v49, 2  ;;  %v1222_v2 = vadd.f32 %v3265_v47, %v1221_v59  ;;  %v3283_v29 = vadd.f32 %v3282_v61, %v3281_v53 }
 0x147   : > { %v1645_v42 = vrot.slane %v1230_v56, 2 }
 0x148   : > { %v4441_v5 = vsel %vm1654_vm1, %v1641_v33, %v1642_v63  ;;  %v1643_v9 = vrot.slane %v1222_v2, 2 }
 0x149   : > { %v4445_v0 = vsel %vm1654_vm1, %v1644_v4, %v1645_v42 }
 0x14a   : > { %v3515_v41 = vpop.f32.mrb[40].mxu0  ;;  %v3284_v10 = vpop.f32.mrb[40].mxu1  ;;  %v4449_v6 = vsel %vm1654_vm1, %v1642_v63, %v1643_v9  ;;  %v4453_v47 = vsel %vm1654_vm1, %v1643_v9, %v1644_v4 }
 0x14b   : > { %v1243_v11 = vadd.f32 %v3515_v41, %v3280_v52  ;;  %v1234_v12 = vpop.f32.mrb[41].mxu0  ;;  %v3285_v14 = vpop.f32.mrb[41].mxu1 }
 0x14c   : > { %v1235_v19 = vadd.f32 %v3274_v23, %v1234_v12  ;;  %v3516_v20 = vpop.f32.mrb[42].mxu0  ;;  %v3286_v21 = vadd.f32 %v3285_v14, %v3284_v10  ;;  %v3287_v30 = vpop.f32.mrb[42].mxu1 }
 0x14d   : > { %v1246_v31 = vadd.f32 %v3516_v20, %v3283_v29  ;;  %v1237_v35 = vpop.f32.mrb[43].mxu0  ;;  %v3288_v13 = vpop.f32.mrb[43].mxu1  ;;  %v1648_v33 = vrot.slane %v1243_v11, 2 }
 0x14e   : > { %v1646_v39 = vrot.slane %v1235_v19, 2  ;;  %v1238_v55 = vadd.f32 %v3277_v27, %v1237_v35  ;;  %v3289_v32 = vadd.f32 %v3288_v13, %v3287_v30 }
 0x14f   : > { %v1649_v44 = vrot.slane %v1246_v31, 2 }
 0x150   : > { %v4457_v45 = vsel %vm1654_vm1, %v1645_v42, %v1646_v39  ;;  %v1647_v62 = vrot.slane %v1238_v55, 2 }
 0x151   : > { %v4461_v22 = vsel %vm1654_vm1, %v1648_v33, %v1649_v44 }
 0x152   : > { %v3290_v23 = vpop.f32.mrb[44].mxu1  ;;  %v3519_v46 = vpop.f32.mrb[44].mxu0  ;;  %v4465_v48 = vsel %vm1654_vm1, %v1646_v39, %v1647_v62  ;;  %v4469_v27 = vsel %vm1654_vm1, %v1647_v62, %v1648_v33 }
 0x153   : > { %v3291_v49 = vpop.f32.mrb[45].mxu1  ;;  %v1250_v51 = vpop.f32.mrb[45].mxu0 }
 0x154   : > { %v3292_v52 = vadd.f32 %v3291_v49, %v3290_v23  ;;  %v1251_v53 = vadd.f32 %v3286_v21, %v1250_v51  ;;  %v3293_v56 = vpop.f32.mrb[46].mxu1  ;;  %v3520_v59 = vpop.f32.mrb[46].mxu0  ;;  %v4498_v51 = vld [vmem:[%s5008_s2] ss:$0 sm:$0xff] }
 0x155   : > { %v3294_v61 = vpop.f32.mrb[47].mxu1  ;;  %v1253_v63 = vpop.f32.mrb[47].mxu0 }
 0x156   : > { %v1259_v2 = vadd.f32 %v3519_v46, %v3292_v52  ;;  %v1650_v29 = vrot.slane %v1251_v53, 2  ;;  %v3295_v4 = vadd.f32 %v3294_v61, %v3293_v56  ;;  %v1254_v42 = vadd.f32 %v3289_v32, %v1253_v63 }
 0x158   : > { %v1652_v9 = vrot.slane %v1259_v2, 2  ;;  %v4473_v41 = vsel %vm1654_vm1, %v1649_v44, %v1650_v29  ;;  %v1262_v10 = vadd.f32 %v3520_v59, %v3295_v4  ;;  %v1651_v11 = vrot.slane %v1254_v42, 2 }
 0x15a   : > { %v1653_v12 = vrot.slane %v1262_v10, 2  ;;  %v3328_v14 = vpop.f32.mrb[48].mxu0  ;;  %v3539_v19 = vpop.f32.mrb[48].mxu1  ;;  %v4477_v20 = vsel %vm1654_vm1, %v1650_v29, %v1651_v11  ;;  %v4481_v21 = vsel %vm1654_vm1, %v1651_v11, %v1652_v9 }
 0x15b   : > { %v3329_v30 = vpop.f32.mrb[49].mxu0  ;;  %v1575_v31 = vpop.f32.mrb[49].mxu1 }
 0x15c   : > { %v3330_v35 = vadd.f32 %v3329_v30, %v3328_v14  ;;  %v3331_v13 = vpop.f32.mrb[50].mxu0  ;;  %v3540_v39 = vpop.f32.mrb[50].mxu1  ;;  %v4485_v55 = vsel %vm1654_vm1, %v1652_v9, %v1653_v12  ;;  %v4491_v32 = vsel %vm1654_vm1, %v1653_v12, %v1638_v43 }
 0x15d   : > { %v3332_v33 = vpop.f32.mrb[51].mxu0  ;;  %v1578_v44 = vpop.f32.mrb[51].mxu1 }
 0x15e   : > { %v3333_v62 = vadd.f32 %v3332_v33, %v3331_v13  ;;  %v1479_v23 = vadd.f32 %v3330_v35, %v4333_v7 }
 0x160   : > { %v1576_v46 = vadd.f32 %v1575_v31, %v1479_v23  ;;  %v1482_v49 = vadd.f32 %v3333_v62, %v4339_v17 }
 0x162   : > { %v1671_v52 = vadd.f32 %v4433_v26, %v1576_v46  ;;  %v1579_v28 = vadd.f32 %v1578_v44, %v1482_v49  ;;  %v3334_v53 = vpop.f32.mrb[52].mxu0  ;;  %v4501_v56 = vpop.f32.mrb[52].mxu1 }
 0x163   : > { %v3335_v43 = vpop.f32.mrb[53].mxu0  ;;  %v1591_v59 = vpop.f32.mrb[53].mxu1 }
 0x164   : > { %v4504_v61 = vadd.f32 %v4498_v51, %v1671_v52  ;;  %v1672_v7 = vadd.f32 %v4437_v1, %v1579_v28  ;;  %v3336_v63 = vadd.f32 %v3335_v43, %v3334_v53  ;;  %v3337_v17 = vpop.f32.mrb[54].mxu0  ;;  %v4507_v2 = vpop.f32.mrb[54].mxu1 }
 0x165   : > { %v3338_v29 = vpop.f32.mrb[55].mxu0  ;;  %v1594_v4 = vpop.f32.mrb[55].mxu1 }
 0x166   : > { %v1695_v42 = vadd.f32 %v4498_v51, %v1672_v7  ;;  %v1487_v26 = vadd.f32 %v3336_v63, %v4343_v25  ;;  %v1710_v9 = vrot.slane %v4504_v61, 1  ;;  %v3339_v10 = vadd.f32 %v3338_v29, %v3337_v17 }
 0x167   : > { %v1758_v11 = vrot.slane %v4504_v61, 2 }
 0x168   : > { %v1711_v12 = vrot.slane %v1695_v42, 1  ;;  %v1759_v14 = vrot.slane %v1695_v42, 2  ;;  %v1584_v30 = vadd.f32 %v3539_v19, %v1487_v26  ;;  %v1490_v1 = vadd.f32 %v3339_v10, %v4349_v24 }
 0x16a   : > { %v1673_v31 = vadd.f32 %v4427_v60, %v1584_v30  ;;  %v3340_v35 = vpop.f32.mrb[56].mxu0  ;;  %v1740_v13 = vsel %vm1283_vm0, %v1710_v9, %v1711_v12  ;;  %v1788_v25 = vsel %vm1654_vm1, %v1758_v11, %v1759_v14  ;;  %v4523_v33 = vpop.f32.mrb[56].mxu1  ;;  %v1587_v44 = vadd.f32 %v3540_v39, %v1490_v1 }
 0x16b   : > { %v3341_v62 = vpop.f32.mrb[57].mxu0  ;;  %v1742_v19 = vmax.f32 %v4504_v61, %v1740_v13  ;;  %v4526_v24 = vpop.f32.mrb[57].mxu1  ;;  %v2721_v61 = vld [vmem:[%s5011_s5] sm:$0xff] }
 0x16c   : > { %v1696_v60 = vadd.f32 %v4498_v51, %v1673_v31  ;;  %v3342_v23 = vadd.f32 %v3341_v62, %v3340_v35  ;;  %v3343_v46 = vpop.f32.mrb[58].mxu0  ;;  %v4529_v49 = vpop.f32.mrb[58].mxu1  ;;  %v1674_v52 = vadd.f32 %v4441_v5, %v1587_v44 }
 0x16d   : > { %v3344_v28 = vpop.f32.mrb[59].mxu0  ;;  %v1790_v53 = vmax.f32 %v1742_v19, %v1788_v25  ;;  %v4532_v43 = vpop.f32.mrb[59].mxu1 }
 0x16e   : > { %v1712_v7 = vrot.slane %v1696_v60, 1  ;;  %v3345_v63 = vadd.f32 %v3344_v28, %v3343_v46  ;;  %v1495_v39 = vadd.f32 %v3342_v23, %v4357_v38  ;;  %v1760_v17 = vrot.slane %v1696_v60, 2 }
 0x16f   : > { %v1697_v29 = vadd.f32 %v4498_v51, %v1674_v52  ;;  %v1806_v28 = vmax.f32 %v1790_v53, 0.0 }
 0x170   : > { %v1592_v26 = vadd.f32 %v1591_v59, %v1495_v39  ;;  %v1498_v10 = vadd.f32 %v3345_v63, %v4367_v50  ;;  %v1739_v30 = vsel %vm1283_vm0, %v1711_v12, %v1712_v7  ;;  %v1787_v5 = vsel %vm1654_vm1, %v1759_v14, %v1760_v17 }
 0x171   : > { %v1713_v1 = vrot.slane %v1697_v29, 1  ;;  %v1761_v31 = vrot.slane %v1697_v29, 2  ;;  %v1743_v35 = vmax.f32 %v1695_v42, %v1739_v30 }
 0x172   : > { %v1675_v13 = vadd.f32 %v4449_v6, %v1592_v26  ;;  %v1595_v25 = vadd.f32 %v1594_v4, %v1498_v10  ;;  %v3346_v44 = vpop.f32.mrb[60].mxu0  ;;  %v4542_v38 = vpop.f32.mrb[60].mxu1 }
 0x173   : > { %v3347_v62 = vpop.f32.mrb[61].mxu0  ;;  %v1791_v19 = vmax.f32 %v1743_v35, %v1787_v5  ;;  %v1738_v50 = vsel %vm1283_vm0, %v1712_v7, %v1713_v1  ;;  %v1786_v59 = vsel %vm1654_vm1, %v1760_v17, %v1761_v31  ;;  %v4548_v12 = vpop.f32.mrb[61].mxu1 }
 0x174   : > { %v1698_v14 = vadd.f32 %v4498_v51, %v1675_v13  ;;  %v1676_v42 = vadd.f32 %v4453_v47, %v1595_v25  ;;  %v3348_v23 = vadd.f32 %v3347_v62, %v3346_v44  ;;  %v3349_v6 = vpop.f32.mrb[62].mxu0  ;;  %v1744_v4 = vmax.f32 %v1696_v60, %v1738_v50  ;;  %v4552_v46 = vpop.f32.mrb[62].mxu1 }
 0x175   : > { %v3350_v52 = vpop.f32.mrb[63].mxu0  ;;  %v1807_v63 = vmax.f32 %v1791_v19, 0.0  ;;  %v4554_v39 = vpop.f32.mrb[63].mxu1 }
 0x176   : > { %v1714_v7 = vrot.slane %v1698_v14, 1  ;;  %v1762_v26 = vrot.slane %v1698_v14, 2  ;;  %v1699_v17 = vadd.f32 %v4498_v51, %v1676_v42  ;;  %v1503_v10 = vadd.f32 %v3348_v23, %v4373_v57 }
 0x177   : > { %v3351_v30 = vadd.f32 %v3350_v52, %v3349_v6  ;;  %v4558_v5 = vpack.c.bf16 %v1807_v63, %v1806_v28  ;;  %v1792_v47 = vmax.f32 %v1744_v4, %v1786_v59 }
 0x178   : > { %v1737_v60 = vsel %vm1283_vm0, %v1713_v1, %v1714_v7  ;;  %v1785_v35 = vsel %vm1654_vm1, %v1761_v31, %v1762_v26  ;;  %v1715_v53 = vrot.slane %v1699_v17, 1  ;;  %v1763_v13 = vrot.slane %v1699_v17, 2 }
 0x179   : > { %v1745_v25 = vmax.f32 %v1697_v29, %v1737_v60  ;;  %v1600_v44 = vadd.f32 %v4501_v56, %v1503_v10  ;;  %v1506_v62 = vadd.f32 %v3351_v30, %v4379_v8  ;;  %3569 = vmatprep.mubr.bf16.mxu1 %v4558_v5  ;;  %3601 = vmatprep.mubr.bf16.mxu0 %v4558_v5  ;;  %v1808_v23 = vmax.f32 %v1792_v47, 0.0 }
 0x17a   : > { %v3352_v57 = vpop.f32.mrb[64].mxu0  ;;  %v1736_v19 = vsel %vm1283_vm0, %v1714_v7, %v1715_v53  ;;  %v1784_v1 = vsel %vm1654_vm1, %v1762_v26, %v1763_v13 }
 0x17b   : > { %v1677_v31 = vadd.f32 %v4445_v0, %v1600_v44  ;;  %v1603_v50 = vadd.f32 %v4507_v2, %v1506_v62  ;;  %v3353_v29 = vpop.f32.mrb[65].mxu0  ;;  %v1793_v59 = vmax.f32 %v1745_v25, %v1785_v35  ;;  %v1746_v56 = vmax.f32 %v1698_v14, %v1736_v19  ;;  %v3841_v14 = vld [vmem:[%s5009_s3 + $0x8] sm:$0xff]  }
 0x17c   : > { %v3354_v42 = vadd.f32 %v3353_v29, %v3352_v57  ;;  %v3355_v8 = vpop.f32.mrb[66].mxu0 }
 0x17d   : > { %v1700_v6 = vadd.f32 %v4498_v51, %v1677_v31  ;;  %v1678_v4 = vadd.f32 %v4457_v45, %v1603_v50  ;;  %v3356_v52 = vpop.f32.mrb[67].mxu0  ;;  %v1809_v28 = vmax.f32 %v1793_v59, 0.0  ;;  %v1794_v63 = vmax.f32 %v1746_v56, %v1784_v1 }
 0x17e   : > { %v3357_v7 = vadd.f32 %v3356_v52, %v3355_v8  ;;  %v1511_v26 = vadd.f32 %v3354_v42, %v4383_v15 }
 0x17f   : > { %v1716_v10 = vrot.slane %v1700_v6, 1  ;;  %v1701_v0 = vadd.f32 %v4498_v51, %v1678_v4  ;;  %v4578_v2 = vpack.c.bf16 %v1809_v28, %v1808_v23  ;;  %v1764_v30 = vrot.slane %v1700_v6, 2 }
 0x180   : > { %v1608_v47 = vadd.f32 %v4526_v24, %v1511_v26  ;;  %v1514_v45 = vadd.f32 %v3357_v7, %v4388_v37  ;;  %v1810_v23 = vmax.f32 %v1794_v63, 0.0 }
 0x181   : > { %v1717_v60 = vrot.slane %v1701_v0, 1  ;;  %3570 = vmatmul.mubr.bf16.vlgmr.msra.gmra.mrb[64].mxu1 %v4578_v2  ;;  %3602 = vmatmul.mubr.bf16.vlgmr.msra.gmra.mrb[80].mxu0 %v4578_v2  ;;  %v1735_v15 = vsel %vm1283_vm0, %v1715_v53, %v1716_v10  ;;  %v1783_v35 = vsel %vm1654_vm1, %v1763_v13, %v1764_v30  ;;  %v1765_v25 = vrot.slane %v1701_v0, 2  ;;  %v3842_v53 = vld [vmem:[%s5009_s3 + $0x10] sm:$0xff]  }
 0x182   : > { %v1679_v44 = vadd.f32 %v4465_v48, %v1608_v47  ;;  %v1611_v62 = vadd.f32 %v4532_v43, %v1514_v45  ;;  %v3358_v57 = vpop.f32.mrb[68].mxu0  ;;  %v1747_v24 = vmax.f32 %v1699_v17, %v1735_v15  ;;  %3618 = vmatpush3.bf16.msra.mxu1 %v4362_v40 }
 0x183   : > { %v3359_v37 = vpop.f32.mrb[69].mxu0  ;;  %v1734_v19 = vsel %vm1283_vm0, %v1716_v10, %v1717_v60  ;;  %v1782_v1 = vsel %vm1654_vm1, %v1764_v30, %v1765_v25  ;;  %3619 = vmatprep.subr.bf16.mxu1 %v3841_v14 }
 0x184   : > { %v1702_v48 = vadd.f32 %v4498_v51, %v1679_v44  ;;  %v1680_v43 = vadd.f32 %v4469_v27, %v1611_v62  ;;  %v3360_v13 = vadd.f32 %v3359_v37, %v3358_v57  ;;  %v3361_v17 = vpop.f32.mrb[70].mxu0  ;;  %v1795_v31 = vmax.f32 %v1747_v24, %v1783_v35 }
 0x185   : > { %v3362_v40 = vpop.f32.mrb[71].mxu0  ;;  %v1748_v50 = vmax.f32 %v1700_v6, %v1734_v19  ;;  %v3843_v6 = vld [vmem:[%s5009_s3 + $0x18] sm:$0xff]  }
 0x186   : > { %v1718_v29 = vrot.slane %v1702_v48, 1  ;;  %v1766_v59 = vrot.slane %v1702_v48, 2  ;;  %v1703_v56 = vadd.f32 %v4498_v51, %v1680_v43  ;;  %v1519_v42 = vadd.f32 %v3360_v13, %v4392_v16  ;;  %3620 = vmatpush3.bf16.msra.mxu1 %v3841_v14 }
 0x187   : > { %v3363_v8 = vadd.f32 %v3362_v40, %v3361_v17  ;;  %v1811_v4 = vmax.f32 %v1795_v31, 0.0  ;;  %v1796_v52 = vmax.f32 %v1748_v50, %v1782_v1  ;;  %3621 = vmatprep.subr.bf16.mxu1 %v3842_v53  ;;  %v3845_v17 = vld [vmem:[%s5009_s3 + $0x28] sm:$0xff]  }
 0x188   : > { %v1719_v28 = vrot.slane %v1703_v56, 1  ;;  %v1767_v7 = vrot.slane %v1703_v56, 2  ;;  %v1616_v27 = vadd.f32 %v4523_v33, %v1519_v42  ;;  %v1733_v26 = vsel %vm1283_vm0, %v1717_v60, %v1718_v29 }
 0x189   : > { %v1522_v10 = vadd.f32 %v3363_v8, %v4397_v54  ;;  %v4612_v16 = vpack.c.bf16 %v1811_v4, %v1810_v23  ;;  %v1749_v30 = vmax.f32 %v1701_v0, %v1733_v26  ;;  %v1781_v63 = vsel %vm1654_vm1, %v1765_v25, %v1766_v59 }
 0x18a   : > { %v1681_v14 = vadd.f32 %v4461_v22, %v1616_v27  ;;  %v3364_v47 = vpop.f32.mrb[72].mxu0  ;;  %v1732_v33 = vsel %vm1283_vm0, %v1718_v29, %v1719_v28  ;;  %v1780_v45 = vsel %vm1654_vm1, %v1766_v59, %v1767_v7  ;;  %3622 = vmatpush3.bf16.msra.mxu1 %v3842_v53  ;;  %v3844_v22 = vld [vmem:[%s5009_s3 + $0x20] sm:$0xff]  }
 0x18b   : > { %v1619_v60 = vadd.f32 %v4529_v49, %v1522_v10  ;;  %3573 = vmatprep.mubr.bf16.mxu1 %v4612_v16  ;;  %3605 = vmatprep.mubr.bf16.mxu0 %v4612_v16  ;;  %v3365_v54 = vpop.f32.mrb[73].mxu0  ;;  %v1797_v0 = vmax.f32 %v1749_v30, %v1781_v63  ;;  %v1750_v15 = vmax.f32 %v1702_v48, %v1732_v33  ;;  %v1812_v49 = vmax.f32 %v1796_v52, 0.0 }
 0x18c   : > { %v1704_v35 = vadd.f32 %v4498_v51, %v1681_v14  ;;  %v3366_v25 = vadd.f32 %v3365_v54, %v3364_v47  ;;  %v3367_v44 = vpop.f32.mrb[74].mxu0  ;;  %3623 = vmatprep.subr.bf16.mxu1 %v3843_v6 }
 0x18d   : > { %v1682_v62 = vadd.f32 %v4473_v41, %v1619_v60  ;;  %v3368_v57 = vpop.f32.mrb[75].mxu0  ;;  %v1813_v24 = vmax.f32 %v1797_v0, 0.0  ;;  %v1798_v37 = vmax.f32 %v1750_v15, %v1780_v45 }
 0x18e   : > { %v1720_v19 = vrot.slane %v1704_v35, 1  ;;  %v3369_v1 = vadd.f32 %v3368_v57, %v3367_v44  ;;  %v1527_v53 = vadd.f32 %v3366_v25, %v4401_v3  ;;  %v1768_v48 = vrot.slane %v1704_v35, 2  ;;  %3624 = vmatpush3.bf16.msra.mxu1 %v3843_v6 }
 0x18f   : > { %v1705_v43 = vadd.f32 %v4498_v51, %v1682_v62  ;;  %v4631_v13 = vpack.c.bf16 %v1813_v24, %v1812_v49  ;;  %3625 = vmatprep.subr.bf16.mxu1 %v3844_v22  ;;  %v1814_v6 = vmax.f32 %v1798_v37, 0.0 }
 0x190   : > { %v1624_v41 = vadd.f32 %v4548_v12, %v1527_v53  ;;  %v1530_v31 = vadd.f32 %v3369_v1, %v4407_v18  ;;  %v1731_v40 = vsel %vm1283_vm0, %v1719_v28, %v1720_v19  ;;  %v1779_v3 = vsel %vm1654_vm1, %v1767_v7, %v1768_v48 }
 0x191   : > { %v1721_v50 = vrot.slane %v1705_v43, 1  ;;  %3574 = vmatmul.mubr.bf16.gmra.mrb[68].mxu1 %v4631_v13  ;;  %3606 = vmatmul.mubr.bf16.gmra.mrb[84].mxu0 %v4631_v13  ;;  %v1751_v29 = vmax.f32 %v1703_v56, %v1731_v40  ;;  %v1769_v59 = vrot.slane %v1705_v43, 2  ;;  %v3846_v56 = vld [vmem:[%s5009_s3 + $0x30] sm:$0xff]  }
 0x192   : > { %v1683_v42 = vadd.f32 %v4477_v20, %v1624_v41  ;;  %v1627_v8 = vadd.f32 %v4554_v39, %v1530_v31  ;;  %v3370_v12 = vpop.f32.mrb[76].mxu0  ;;  %3626 = vmatpush3.bf16.msra.mxu1 %v3844_v22 }
 0x193   : > { %v3371_v18 = vpop.f32.mrb[77].mxu0  ;;  %v1799_v23 = vmax.f32 %v1751_v29, %v1779_v3  ;;  %v1730_v4 = vsel %vm1283_vm0, %v1720_v19, %v1721_v50  ;;  %v1778_v52 = vsel %vm1654_vm1, %v1768_v48, %v1769_v59  ;;  %3627 = vmatprep.subr.bf16.mxu1 %v3845_v17 }
 0x194   : > { %v1706_v28 = vadd.f32 %v4498_v51, %v1683_v42  ;;  %v1684_v20 = vadd.f32 %v4481_v21, %v1627_v8  ;;  %v3372_v39 = vadd.f32 %v3371_v18, %v3370_v12  ;;  %v3373_v7 = vpop.f32.mrb[78].mxu0  ;;  %v1752_v27 = vmax.f32 %v1704_v35, %v1730_v4  ;;  %v3847_v21 = vld [vmem:[%s5009_s3 + $0x38] sm:$0xff]  }
 0x195   : > { %v3374_v26 = vpop.f32.mrb[79].mxu0  ;;  %v1815_v10 = vmax.f32 %v1799_v23, 0.0 }
 0x196   : > { %v1722_v30 = vrot.slane %v1706_v28, 1  ;;  %v1770_v63 = vrot.slane %v1706_v28, 2  ;;  %v1707_v14 = vadd.f32 %v4498_v51, %v1684_v20  ;;  %v1535_v47 = vadd.f32 %v3372_v39, %v4414_v34  ;;  %3628 = vmatpush3.bf16.msra.mxu1 %v3845_v17  ;;  %v2725_v39 = vld [vmem:[%s5011_s5 + $0x20] sm:$0xff] }
 0x197   : > { %v3375_v33 = vadd.f32 %v3374_v26, %v3373_v7  ;;  %v1826_v45 = vpack.c.bf16 %v1815_v10, %v1814_v6  ;;  %v1800_v60 = vmax.f32 %v1752_v27, %v1778_v52  ;;  %3629 = vmatprep.subr.bf16.mxu1 %v3846_v56  ;;  %v2726_v7 = vld [vmem:[%s5011_s5 + $0x28] sm:$0xff]  ;;  %v2727_v26 = vld [vmem:[%s5011_s5 + $0x30] sm:$0xff]  ;;  %v2728_v6 = vld [vmem:[%s5011_s5 + $0x38] sm:$0xff] }
 0x198   : > { %v1723_v54 = vrot.slane %v1707_v14, 1  ;;  %v1771_v0 = vrot.slane %v1707_v14, 2  ;;  %v1632_v15 = vadd.f32 %v4542_v38, %v1535_v47  ;;  %v1729_v22 = vsel %vm1283_vm0, %v1721_v50, %v1722_v30  ;;  %v2731_v47 = vld [vmem:[%s5011_s5 + $0x50] sm:$0xff] }
 0x199   : > { %v1538_v35 = vadd.f32 %v3375_v33, %v4420_v36  ;;  %3577 = vmatprep.mubr.bf16.mxu1 %v1826_v45  ;;  %3609 = vmatprep.mubr.bf16.mxu0 %v1826_v45  ;;  %v1753_v34 = vmax.f32 %v1705_v43, %v1729_v22  ;;  %v1777_v25 = vsel %vm1654_vm1, %v1769_v59, %v1770_v63  ;;  %v1816_v19 = vmax.f32 %v1800_v60, 0.0  ;;  %v2732_v33 = vld [vmem:[%s5011_s5 + $0x58] sm:$0xff]  ;;  %v2733_v60 = vld [vmem:[%s5011_s5 + $0x60] sm:$0xff] }
 0x19a   : > { %v1685_v44 = vadd.f32 %v4485_v55, %v1632_v15  ;;  %v1728_v62 = vsel %vm1283_vm0, %v1722_v30, %v1723_v54  ;;  %v1776_v57 = vsel %vm1654_vm1, %v1770_v63, %v1771_v0  ;;  %3630 = vmatpush3.bf16.msra.mxu1 %v3846_v56  ;;  %v3691_v27 = vpack.c.bf16 %v2726_v7, %v2725_v39  ;;  %v2729_v30 = vld [vmem:[%s5011_s5 + $0x40] sm:$0xff]  ;;  %v2730_v63 = vld [vmem:[%s5011_s5 + $0x48] sm:$0xff]  ;;  %v2736_v15 = vld [vmem:[%s5011_s5 + $0x78] sm:$0xff] }
 0x19b   : > { %v1635_v38 = vadd.f32 %v4552_v46, %v1538_v35  ;;  %v1801_v49 = vmax.f32 %v1753_v34, %v1777_v25  ;;  %v1754_v24 = vmax.f32 %v1706_v28, %v1728_v62  ;;  %3631 = vmatprep.subr.bf16.mxu1 %v3847_v21  ;;  %v3694_v10 = vpack.c.bf16 %v2728_v6, %v2727_v26 }
 0x19c   : > { %v1708_v36 = vadd.f32 %v4498_v51, %v1685_v44  ;;  %v3858_v22 = vmov 0.0  }
 0x19d   : > { %v1686_v37 = vadd.f32 %v4491_v32, %v1635_v38  ;;  %v1817_v1 = vmax.f32 %v1801_v49, 0.0  ;;  %v1802_v53 = vmax.f32 %v1754_v24, %v1776_v57 }
 0x19e   : > { %v1724_v55 = vrot.slane %v1708_v36, 1  ;;  %v1772_v48 = vrot.slane %v1708_v36, 2  ;;  %3632 = vmatpush3.bf16.msra.mxu1 %v3847_v21  ;;  %v2734_v21 = vld [vmem:[%s5011_s5 + $0x68] sm:$0xff] }
 0x19f   : > { %v1709_v43 = vadd.f32 %v4498_v51, %v1686_v37  ;;  %v1827_v17 = vpack.c.bf16 %v1817_v1, %v1816_v19  ;;  %v1818_v12 = vmax.f32 %v1802_v53, 0.0 }
 0x1a0   : > { %v1727_v41 = vsel %vm1283_vm0, %v1723_v54, %v1724_v55  ;;  %v1775_v46 = vsel %vm1654_vm1, %v1771_v0, %v1772_v48  ;;  %v3703_v54 = vpack.c.bf16 %v2734_v21, %v2733_v60  ;;  %v2735_v0 = vld [vmem:[%s5011_s5 + $0x70] sm:$0xff] }
 0x1a1   : > { %v1725_v31 = vrot.slane %v1709_v43, 1  ;;  %3578 = vmatmul.mubr.bf16.gmra.mrb[72].mxu1 %v1827_v17  ;;  %3610 = vmatmul.mubr.bf16.gmra.mrb[88].mxu0 %v1827_v17  ;;  %v1755_v40 = vmax.f32 %v1707_v14, %v1727_v41  ;;  %v1773_v32 = vrot.slane %v1709_v43, 2  ;;  %v3697_v14 = vpack.c.bf16 %v2730_v63, %v2729_v30 }
 0x1a2   : > { %v3706_v35 = vpack.c.bf16 %v2736_v15, %v2735_v0 }
 0x1a3   : > { %v1803_v3 = vmax.f32 %v1755_v40, %v1775_v46  ;;  %v1726_v50 = vsel %vm1283_vm0, %v1724_v55, %v1725_v31  ;;  %v1741_v51 = vsel %vm1283_vm0, %v1725_v31, %v1710_v9  ;;  %v1774_v29 = vsel %vm1654_vm1, %v1772_v48, %v1773_v32 }
 0x1a4   : > { %v1756_v59 = vmax.f32 %v1708_v36, %v1726_v50  ;;  %v1757_v42 = vmax.f32 %v1709_v43, %v1741_v51  ;;  %v1789_v8 = vsel %vm1654_vm1, %v1773_v32, %v1758_v11  ;;  %v2722_v11 = vld [vmem:[%s5011_s5 + $0x8] sm:$0xff] }
 0x1a5   : > { %v1819_v18 = vmax.f32 %v1803_v3, 0.0  ;;  %v3685_v20 = vpack.c.bf16 %v2722_v11, %v2721_v61 }
 0x1a6   : > { %v1804_v23 = vmax.f32 %v1756_v59, %v1774_v29  ;;  %v1805_v4 = vmax.f32 %v1757_v42, %v1789_v8 }
 0x1a7   : > { %v1828_v52 = vpack.c.bf16 %v1819_v18, %v1818_v12 }
 0x1a8   : > { %v1820_v56 = vmax.f32 %v1804_v23, 0.0  ;;  %v1821_v28 = vmax.f32 %v1805_v4, 0.0 }
 0x1a9   : > { %3581 = vmatprep.mubr.bf16.mxu1 %v1828_v52  ;;  %3613 = vmatprep.mubr.bf16.mxu0 %v1828_v52 }
 0x1aa   : > { %v1829_v9 = vpack.c.bf16 %v1821_v28, %v1820_v56 }
 0x1ac   : > { %3582 = vmatmul.mubr.bf16.gmra.mrb[76].mxu1 %v1829_v9  ;;  %3614 = vmatmul.mubr.bf16.gmra.mrb[92].mxu0 %v1829_v9 }
 0x1ad   : > { %3633 = vmatprep.mubr.bf16.mxu1 %v4558_v5  ;;  %v3856_v5 = vmov 0.0|0.0   ;;  %3681 = vmatprep.mubr.msk.f32.mxu0 %vm3857_vm2, %v3858_v22 }
 0x1ae   : > { %3684 = vmatprep.subr.bf16.mxu0 %v3856_v5 }
 0x1af   : > { %3686 = vmatpush3.bf16.msra.mxu0 %v3685_v20 }
 0x1b0   : > { %3687 = vmatprep.subr.bf16.mxu0 %v3856_v5 }
 0x1b4   : > { %3634 = vmatmul.mubr.bf16.vlgmr.msra.gmra.mrb[80].mxu1 %v4578_v2  ;;  %v2723_v2 = vld [vmem:[%s5011_s5 + $0x10] sm:$0xff] }
 0x1b5   : > { %3637 = vmatprep.mubr.bf16.mxu1 %v4612_v16  ;;  %v2724_v16 = vld [vmem:[%s5011_s5 + $0x18] sm:$0xff] }
 0x1bc   : > { %3638 = vmatmul.mubr.bf16.gmra.mrb[84].mxu1 %v4631_v13  ;;  %v3688_v13 = vpack.c.bf16 %v2724_v16, %v2723_v2 }
 0x1bd   : > { %3641 = vmatprep.mubr.bf16.mxu1 %v1826_v45  ;;  %v3700_v45 = vpack.c.bf16 %v2732_v33, %v2731_v47 }
 0x1be   : > { %3689 = vmatpush3.bf16.msra.mxu0 %v3688_v13 }
 0x1bf   : > { %3690 = vmatprep.subr.bf16.mxu0 %v3856_v5 }
 0x1c2   : > { %3692 = vmatpush3.bf16.msra.mxu0 %v3691_v27 }
 0x1c3   : > { %3693 = vmatprep.subr.bf16.mxu0 %v3856_v5 }
 0x1c4   : > { %3642 = vmatmul.mubr.bf16.gmra.mrb[88].mxu1 %v1827_v17 }
 0x1c5   : > { %3645 = vmatprep.mubr.bf16.mxu1 %v1828_v52 }
 0x1c6   : > { %3695 = vmatpush3.bf16.msra.mxu0 %v3694_v10 }
 0x1c7   : > { %3696 = vmatprep.subr.bf16.mxu0 %v3856_v5 }
 0x1ca   : > { %3698 = vmatpush3.bf16.msra.mxu0 %v3697_v14 }
 0x1cb   : > { %3699 = vmatprep.subr.bf16.mxu0 %v3856_v5 }
 0x1cc   : > { %3646 = vmatmul.mubr.bf16.gmra.mrb[92].mxu1 %v1829_v9 }
 0x1ce   : > { %3701 = vmatpush3.bf16.msra.mxu0 %v3700_v45 }
 0x1cf   : > { %3702 = vmatprep.subr.bf16.mxu0 %v3856_v5 }
 0x1d2   : > { %3704 = vmatpush3.bf16.msra.mxu0 %v3703_v54 }
 0x1d3   : > { %3705 = vmatprep.subr.bf16.mxu0 %v3856_v5 }
 0x1d6   : > { %3707 = vmatpush3.bf16.msra.mxu0 %v3706_v35 }
 0x254   : > { %v3571_v34 = vpop.f32.mrb[64].mxu1  ;;  %v3603_v25 = vpop.f32.mrb[80].mxu0 }
 0x255   : > { %v4743_v44 = vpop.f32.mrb[65].mxu1  ;;  %v4745_v62 = vpop.f32.mrb[81].mxu0  ;;  %v2172_v49 = vrot.slane %v3571_v34, 1  ;;  %v2349_v24 = vrot.slane %v3603_v25, 2 }
 0x256   : > { %v3572_v57 = vpop.f32.mrb[66].mxu1  ;;  %v3604_v38 = vpop.f32.mrb[82].mxu0  ;;  %v2170_v53 = vrot.slane %v4743_v44, 1  ;;  %v2347_v55 = vrot.slane %v4745_v62, 2  ;;  %v2418_v62 = vadd.s32 8, %v4323_v58 }
 0x257   : > { %v2173_v36 = vrot.slane %v3572_v57, 1  ;;  %v2350_v37 = vrot.slane %v3604_v38, 2  ;;  %v1948_v19 = vpop.f32.mrb[67].mxu1  ;;  %v2110_v1 = vpop.f32.mrb[83].mxu0 }
 0x258   : > { %v2171_v48 = vrot.slane %v1948_v19, 1  ;;  %v2348_v43 = vrot.slane %v2110_v1, 2 }
 0x259   : > { %v4751_v17 = vsel %vm1283_vm0, %v2172_v49, %v2173_v36  ;;  %v4755_v41 = vsel %vm1654_vm1, %v2349_v24, %v2350_v37 }
 0x25a   : > { %v4761_v46 = vsel %vm1283_vm0, %v2170_v53, %v2171_v48  ;;  %v4767_v31 = vsel %vm1654_vm1, %v2347_v55, %v2348_v43  ;;  %v4771_v40 = vsel %vm1283_vm0, %v2171_v48, %v2172_v49  ;;  %v4775_v32 = vsel %vm1654_vm1, %v2348_v43, %v2349_v24 }
 0x264   : > { %v3575_v3 = vpop.f32.mrb[68].mxu1  ;;  %v3607_v50 = vpop.f32.mrb[84].mxu0 }
 0x265   : > { %v1961_v51 = vpop.f32.mrb[69].mxu1  ;;  %v2123_v29 = vpop.f32.mrb[85].mxu0  ;;  %v2176_v18 = vrot.slane %v3575_v3, 1  ;;  %v2353_v23 = vrot.slane %v3607_v50, 2 }
 0x266   : > { %v2174_v59 = vrot.slane %v1961_v51, 1  ;;  %v2351_v42 = vrot.slane %v2123_v29, 2  ;;  %v3576_v8 = vpop.f32.mrb[70].mxu1  ;;  %v3608_v12 = vpop.f32.mrb[86].mxu0  ;;  %v2420_v29 = vadd.s32 24, %v4323_v58 }
 0x267   : > { %v2177_v4 = vrot.slane %v3576_v8, 1  ;;  %v2354_v52 = vrot.slane %v3608_v12, 2  ;;  %v1964_v56 = vpop.f32.mrb[71].mxu1  ;;  %v2126_v28 = vpop.f32.mrb[87].mxu0 }
 0x268   : > { %v2175_v9 = vrot.slane %v1964_v56, 1  ;;  %v2352_v61 = vrot.slane %v2126_v28, 2  ;;  %v4779_v11 = vsel %vm1283_vm0, %v2173_v36, %v2174_v59  ;;  %v4783_v20 = vsel %vm1654_vm1, %v2350_v37, %v2351_v42 }
 0x269   : > { %v4787_v5 = vsel %vm1283_vm0, %v2176_v18, %v2177_v4  ;;  %v4791_v2 = vsel %vm1654_vm1, %v2353_v23, %v2354_v52 }
 0x26a   : > { %v4795_v16 = vsel %vm1283_vm0, %v2174_v59, %v2175_v9  ;;  %v4799_v13 = vsel %vm1654_vm1, %v2351_v42, %v2352_v61  ;;  %v4803_v39 = vsel %vm1283_vm0, %v2175_v9, %v2176_v18  ;;  %v4807_v7 = vsel %vm1654_vm1, %v2352_v61, %v2353_v23 }
 0x274   : > { %v3579_v27 = vpop.f32.mrb[72].mxu1  ;;  %v3611_v26 = vpop.f32.mrb[88].mxu0 }
 0x275   : > { %v1977_v6 = vpop.f32.mrb[73].mxu1  ;;  %v2139_v10 = vpop.f32.mrb[89].mxu0  ;;  %v2180_v33 = vrot.slane %v3579_v27, 1  ;;  %v2357_v45 = vrot.slane %v3611_v26, 2 }
 0x276   : > { %v2178_v30 = vrot.slane %v1977_v6, 1  ;;  %v2355_v63 = vrot.slane %v2139_v10, 2  ;;  %v3580_v14 = vpop.f32.mrb[74].mxu1  ;;  %v3612_v47 = vpop.f32.mrb[90].mxu0 }
 0x277   : > { %v2181_v60 = vrot.slane %v3580_v14, 1  ;;  %v2358_v21 = vrot.slane %v3612_v47, 2  ;;  %v1980_v54 = vpop.f32.mrb[75].mxu1  ;;  %v2142_v0 = vpop.f32.mrb[91].mxu0 }
 0x278   : > { %v2179_v15 = vrot.slane %v1980_v54, 1  ;;  %v2356_v22 = vrot.slane %v2142_v0, 2  ;;  %v4811_v35 = vsel %vm1283_vm0, %v2177_v4, %v2178_v30  ;;  %v4815_v34 = vsel %vm1654_vm1, %v2354_v52, %v2355_v63 }
 0x279   : > { %v4819_v25 = vsel %vm1283_vm0, %v2180_v33, %v2181_v60  ;;  %v4823_v57 = vsel %vm1654_vm1, %v2357_v45, %v2358_v21  ;;  %v2444_v54 = vand.u32 15, %v2418_v62 }
 0x27a   : > { %v4827_v38 = vsel %vm1283_vm0, %v2178_v30, %v2179_v15  ;;  %v4831_v49 = vsel %vm1654_vm1, %v2355_v63, %v2356_v22  ;;  %v4835_v24 = vsel %vm1283_vm0, %v2179_v15, %v2180_v33  ;;  %v4839_v36 = vsel %vm1654_vm1, %v2356_v22, %v2357_v45 }
 0x27b   : > { %v2458_v33 = vand.u32 15, %v2420_v29  ;;  %v2424_v22 = vadd.s32 56, %v4323_v58  ;;  %vm4904_vm4 = vcmp.lt.s32.totalorder %v2444_v54, 10 }
 0x27d   : > { %vm2628_vm3 = vcmp.lt.s32.totalorder %v2458_v33, 10 }
 0x27f   : > { %v3583_v37 = vpop.f32.mrb[76].mxu1  ;;  %v3615_v19 = vpop.f32.mrb[92].mxu0 }
 0x280   : > { %v1993_v1 = vpop.f32.mrb[77].mxu1  ;;  %v2155_v48 = vpop.f32.mrb[93].mxu0  ;;  %v2184_v59 = vrot.slane %v3583_v37, 1  ;;  %v2361_v42 = vrot.slane %v3615_v19, 2  ;;  %v2422_v37 = vadd.s32 40, %v4323_v58  ;;  %v2426_v19 = vadd.s32 72, %v4323_v58 }
 0x281   : > { %v2182_v43 = vrot.slane %v1993_v1, 1  ;;  %v2359_v3 = vrot.slane %v2155_v48, 2  ;;  %v3584_v50 = vpop.f32.mrb[78].mxu1  ;;  %v3616_v51 = vpop.f32.mrb[94].mxu0 }
 0x282   : > { %v2185_v8 = vrot.slane %v3584_v50, 1  ;;  %v2362_v12 = vrot.slane %v3616_v51, 2  ;;  %v1996_v18 = vpop.f32.mrb[79].mxu1  ;;  %v2158_v23 = vpop.f32.mrb[95].mxu0  ;;  %v2472_v29 = vand.u32 15, %v2422_v37 }
 0x283   : > { %v2183_v4 = vrot.slane %v1996_v18, 1  ;;  %v2360_v52 = vrot.slane %v2158_v23, 2  ;;  %v4844_v56 = vsel %vm1283_vm0, %v2181_v60, %v2182_v43  ;;  %v4848_v28 = vsel %vm1654_vm1, %v2358_v21, %v2359_v3 }
 0x284   : > { %v4852_v9 = vsel %vm1283_vm0, %v2184_v59, %v2185_v8  ;;  %v4856_v61 = vsel %vm1654_vm1, %v2361_v42, %v2362_v12  ;;  %v4862_v27 = vsel %vm1283_vm0, %v2185_v8, %v2170_v53  ;;  %v4868_v26 = vsel %vm1654_vm1, %v2362_v12, %v2347_v55 }
 0x285   : > { %v4872_v6 = vsel %vm1283_vm0, %v2182_v43, %v2183_v4  ;;  %v4876_v10 = vsel %vm1654_vm1, %v2359_v3, %v2360_v52  ;;  %v4880_v44 = vsel %vm1283_vm0, %v2183_v4, %v2184_v59  ;;  %v4884_v53 = vsel %vm1654_vm1, %v2360_v52, %v2361_v42 }
 0x286   : > { %v2486_v43 = vand.u32 15, %v2424_v22  ;;  %vm4926_vm6 = vcmp.lt.s32.totalorder %v2472_v29, 10  ;;  %vm2762_vm0 = vcmask 1046534   ;;  %vm2764_vm1 = vcmask 1047559  }
 0x287   : > { %v3635_v55 = vpop.f32.mrb[80].mxu1 }
 0x288   : > { %v2293_v30 = vadd.f32 %v3635_v55, %v4751_v17  ;;  %v2284_v63 = vpop.f32.mrb[81].mxu1  ;;  %v4897_v17 = vld [vmem:[%s5010_s4] ss:$0 sm:$0xff]  ;;  %v2500_v55 = vand.u32 15, %v2426_v19  ;;  %vm4921_vm5 = vcmp.lt.s32.totalorder %v2486_v43, 10 }
 0x289   : > { %v2285_v14 = vadd.f32 %v2284_v63, %v4761_v46  ;;  %v3636_v47 = vpop.f32.mrb[82].mxu1 }
 0x28a   : > { %v2381_v45 = vadd.f32 %v4755_v41, %v2293_v30  ;;  %v2296_v60 = vadd.f32 %v3636_v47, %v4779_v11  ;;  %v2287_v21 = vpop.f32.mrb[83].mxu1  ;;  %v2428_v11 = vadd.s32 88, %v4323_v58  ;;  %vm4935_vm8 = vcmp.lt.s32.totalorder %v2500_v55, 10 }
 0x28b   : > { %v2379_v0 = vadd.f32 %v4767_v31, %v2285_v14  ;;  %v2288_v15 = vadd.f32 %v2287_v21, %v4771_v40 }
 0x28c   : > { %v2382_v46 = vadd.f32 %v4783_v20, %v2296_v60  ;;  %v2404_v1 = vadd.f32 %v4897_v17, %v2381_v45  ;;  %v2514_v18 = vand.u32 15, %v2428_v11  ;;  %v4940_v60 = vadd.s32 120, %v4323_v58 }
 0x28d   : > { %v2380_v41 = vadd.f32 %v4775_v32, %v2288_v15  ;;  %v2402_v3 = vadd.f32 %v4897_v17, %v2379_v0  ;;  %v4945_v15 = vadd.s32 104, %v4323_v58 }
 0x28e   : > { %v2405_v31 = vadd.f32 %v4897_v17, %v2382_v46  ;;  %vm4930_vm7 = vcmp.lt.s32.totalorder %v2514_v18, 10 }
 0x28f   : > { %v2403_v48 = vadd.f32 %v4897_v17, %v2380_v41  ;;  %v3639_v20 = vpop.f32.mrb[84].mxu1 }
 0x290   : > { %v2644_v50 = vsel %vm2628_vm3, %v2405_v31, -inf  ;;  %v2309_v32 = vadd.f32 %v3639_v20, %v4787_v5  ;;  %v2300_v51 = vpop.f32.mrb[85].mxu1 }
 0x291   : > { %v2664_v59 = vmax.f32 %v2404_v1, %v2644_v50  ;;  %v2642_v42 = vsel %vm4904_vm4, %v2403_v48, -inf  ;;  %v2301_v8 = vadd.f32 %v2300_v51, %v4795_v16  ;;  %v3640_v12 = vpop.f32.mrb[86].mxu1 }
 0x292   : > { %v2657_v23 = vmax.f32 %v2402_v3, %v2642_v42  ;;  %v2385_v4 = vadd.f32 %v4791_v2, %v2309_v32  ;;  %v2312_v52 = vadd.f32 %v3640_v12, %v4811_v35  ;;  %v2303_v62 = vpop.f32.mrb[87].mxu1 }
 0x293   : > { %v2665_v30 = vrot.slane %v2664_v59, 4  ;;  %v2383_v5 = vadd.f32 %v4799_v13, %v2301_v8  ;;  %v2304_v63 = vadd.f32 %v2303_v62, %v4803_v39 }
 0x294   : > { %v2658_v14 = vrot.slane %v2657_v23, 4  ;;  %v2386_v47 = vadd.f32 %v4815_v34, %v2312_v52 }
 0x295   : > { %v2666_v16 = vmax.f32 %v2664_v59, %v2665_v30  ;;  %v2384_v45 = vadd.f32 %v4807_v7, %v2304_v63  ;;  %v2408_v7 = vadd.f32 %v4897_v17, %v2385_v4  ;;  %v2406_v46 = vadd.f32 %v4897_v17, %v2383_v5 }
 0x296   : > { %v2659_v13 = vmax.f32 %v2657_v23, %v2658_v14  ;;  %v2409_v39 = vadd.f32 %v4897_v17, %v2386_v47 }
 0x297   : > { %v2667_v21 = vrot.slane %v2666_v16, 2  ;;  %v2407_v54 = vadd.f32 %v4897_v17, %v2384_v45  ;;  %v3643_v0 = vpop.f32.mrb[88].mxu1 }
 0x298   : > { %v2660_v22 = vrot.slane %v2659_v13, 2  ;;  %v2648_v37 = vsel %vm4921_vm5, %v2409_v39, -inf  ;;  %v2325_v41 = vadd.f32 %v3643_v0, %v4819_v25  ;;  %v2316_v11 = vpop.f32.mrb[89].mxu1 }
 0x299   : > { %v2668_v31 = vmax.f32 %v2666_v16, %v2667_v21  ;;  %v2678_v40 = vmax.f32 %v2408_v7, %v2648_v37  ;;  %v2646_v19 = vsel %vm4926_vm6, %v2407_v54, -inf  ;;  %v2317_v1 = vadd.f32 %v2316_v11, %v4827_v38  ;;  %v3644_v48 = vpop.f32.mrb[90].mxu1 }
 0x29a   : > { %v2661_v20 = vmax.f32 %v2659_v13, %v2660_v22  ;;  %v2671_v58 = vmax.f32 %v2406_v46, %v2646_v19  ;;  %v2389_v43 = vadd.f32 %v4823_v57, %v2325_v41  ;;  %v2328_v3 = vadd.f32 %v3644_v48, %v4844_v56  ;;  %v2319_v50 = vpop.f32.mrb[91].mxu1 }
 0x29b   : > { %v2669_v32 = vrot.slane %v2668_v31, 1  ;;  %v2679_v51 = vrot.slane %v2678_v40, 4  ;;  %v2387_v25 = vadd.f32 %v4831_v49, %v2317_v1  ;;  %v2320_v29 = vadd.f32 %v2319_v50, %v4835_v24 }
 0x29c   : > { %v2662_v59 = vrot.slane %v2661_v20, 1  ;;  %v2672_v42 = vrot.slane %v2671_v58, 4  ;;  %v2390_v8 = vadd.f32 %v4848_v28, %v2328_v3  ;;  %v2542_v38 = vand.u32 15, %v4940_v60 }
 0x29d   : > { %v2670_v12 = vmax.f32 %v2668_v31, %v2669_v32  ;;  %v2680_v18 = vmax.f32 %v2678_v40, %v2679_v51  ;;  %v2388_v23 = vadd.f32 %v4839_v36, %v2320_v29  ;;  %v2528_v57 = vand.u32 15, %v4945_v15 }
 0x29e   : > { %v2663_v56 = vmax.f32 %v2661_v20, %v2662_v59  ;;  %v2673_v4 = vmax.f32 %v2671_v58, %v2672_v42  ;;  %v2412_v52 = vadd.f32 %v4897_v17, %v2389_v43  ;;  %v2413_v49 = vadd.f32 %v4897_v17, %v2390_v8 }
 0x29f   : > { %v2714_v62 = vmax.f32 %v2670_v12, 0.0  ;;  %v2681_v24 = vrot.slane %v2680_v18, 2  ;;  %v2410_v55 = vadd.f32 %v4897_v17, %v2387_v25  ;;  %v2411_v28 = vadd.f32 %v4897_v17, %v2388_v23  ;;  %v3647_v30 = vpop.f32.mrb[92].mxu1 }
 0x2a0   : > { %v2713_v5 = vmax.f32 %v2663_v56, 0.0  ;;  %v2674_v63 = vrot.slane %v2673_v4, 2  ;;  %v2652_v36 = vsel %vm4930_vm7, %v2413_v49, -inf  ;;  %v2341_v14 = vadd.f32 %v3647_v30, %v4852_v9  ;;  %v2332_v47 = vpop.f32.mrb[93].mxu1 }
 0x2a1   : > { %v2682_v33 = vmax.f32 %v2680_v18, %v2681_v24  ;;  %v2692_v16 = vmax.f32 %v2412_v52, %v2652_v36  ;;  %v2650_v45 = vsel %vm4935_vm8, %v2411_v28, -inf  ;;  %v2333_v2 = vadd.f32 %v2332_v47, %v4872_v6  ;;  %v3648_v13 = vpop.f32.mrb[94].mxu1 }
 0x2a2   : > { %v2753_v39 = vsel %vm2752_vm9, %v2714_v62, %v2713_v5  ;;  %v2675_v60 = vmax.f32 %v2673_v4, %v2674_v63  ;;  %v2685_v21 = vmax.f32 %v2410_v55, %v2650_v45  ;;  %v2393_v7 = vadd.f32 %v4856_v61, %v2341_v14  ;;  %v2335_v54 = vpop.f32.mrb[95].mxu1 }
 0x2a3   : > { %v2683_v35 = vrot.slane %v2682_v33, 1  ;;  %v2693_v0 = vrot.slane %v2692_v16, 4  ;;  %v2391_v9 = vadd.f32 %v4876_v10, %v2333_v2  ;;  %v2344_v15 = vadd.f32 %v3648_v13, %v4862_v27 }
 0x2a4   : > { %v2676_v22 = vrot.slane %v2675_v60, 1  ;;  %v2686_v46 = vrot.slane %v2685_v21, 4  ;;  %v2336_v34 = vadd.f32 %v2335_v54, %v4880_v44  ;;  %vm4978_vm10 = vcmp.lt.s32.totalorder %v2542_v38, 10 }
 0x2a5   : > { %v2684_v37 = vmax.f32 %v2682_v33, %v2683_v35  ;;  %v2694_v6 = vmax.f32 %v2692_v16, %v2693_v0  ;;  %v2394_v41 = vadd.f32 %v4868_v26, %v2344_v15  ;;  %vm4983_vm11 = vcmp.lt.s32.totalorder %v2528_v57, 10  ;;  %v3149_v16 = vld [vmem:[%s5012_s6] ss:$0 sm:$0xff] }
 0x2a6   : > { %v2677_v61 = vmax.f32 %v2675_v60, %v2676_v22  ;;  %v2687_v31 = vmax.f32 %v2685_v21, %v2686_v46  ;;  %v2392_v40 = vadd.f32 %v4884_v53, %v2336_v34  ;;  %v2416_v26 = vadd.f32 %v4897_v17, %v2393_v7 }
 0x2a7   : > { %v2695_v27 = vrot.slane %v2694_v6, 2  ;;  %v2417_v19 = vadd.f32 %v4897_v17, %v2394_v41  ;;  %v2716_v20 = vmax.f32 %v2684_v37, 0.0  ;;  %v2414_v43 = vadd.f32 %v4897_v17, %v2391_v9 }
 0x2a8   : > { %v2715_v44 = vmax.f32 %v2677_v61, 0.0  ;;  %v2688_v1 = vrot.slane %v2687_v31, 2  ;;  %v2415_v48 = vadd.f32 %v4897_v17, %v2392_v40 }
 0x2a9   : > { %v2696_v58 = vmax.f32 %v2694_v6, %v2695_v27  ;;  %v2656_v53 = vsel %vm4978_vm10, %v2417_v19, -inf }
 0x2aa   : > { %v2689_v3 = vmax.f32 %v2687_v31, %v2688_v1  ;;  %v2706_v50 = vmax.f32 %v2416_v26, %v2656_v53  ;;  %v2654_v32 = vsel %vm4983_vm11, %v2415_v48, -inf  ;;  %v2755_v51 = vsel %vm2754_vm12, %v2715_v44, %v2753_v39 }
 0x2ab   : > { %v2697_v25 = vrot.slane %v2696_v58, 1  ;;  %v2699_v29 = vmax.f32 %v2414_v43, %v2654_v32  ;;  %v2757_v59 = vsel %vm2756_vm13, %v2716_v20, %v2755_v51 }
 0x2ac   : > { %v2690_v42 = vrot.slane %v2689_v3, 1  ;;  %v2707_v8 = vrot.slane %v2706_v50, 4 }
 0x2ad   : > { %v2698_v38 = vmax.f32 %v2696_v58, %v2697_v25  ;;  %v2700_v12 = vrot.slane %v2699_v29, 4 }
 0x2ae   : > { %v2691_v18 = vmax.f32 %v2689_v3, %v2690_v42  ;;  %v2708_v23 = vmax.f32 %v2706_v50, %v2707_v8 }
 0x2af   : > { %v2701_v57 = vmax.f32 %v2699_v29, %v2700_v12  ;;  %v2718_v4 = vmax.f32 %v2698_v38, 0.0 }
 0x2b0   : > { %v2717_v17 = vmax.f32 %v2691_v18, 0.0  ;;  %v2709_v56 = vrot.slane %v2708_v23, 2 }
 0x2b1   : > { %v2702_v52 = vrot.slane %v2701_v57, 2 }
 0x2b2   : > { %v2710_v49 = vmax.f32 %v2708_v23, %v2709_v56  ;;  %v2759_v62 = vsel %vm2758_vm14, %v2717_v17, %v2757_v59 }
 0x2b3   : > { %v2703_v24 = vmax.f32 %v2701_v57, %v2702_v52  ;;  %v2761_v55 = vsel %vm2760_vm15, %v2718_v4, %v2759_v62 }
 0x2b4   : > { %v2711_v28 = vrot.slane %v2710_v49, 1 }
 0x2b5   : > { %v2704_v30 = vrot.slane %v2703_v24, 1 }
 0x2b6   : > { %v2712_v5 = vmax.f32 %v2710_v49, %v2711_v28 }
 0x2b7   : > { %v2705_v63 = vmax.f32 %v2703_v24, %v2704_v30 }
 0x2b8   : > { %v2720_v14 = vmax.f32 %v2712_v5, 0.0 }
 0x2b9   : > { %v2719_v36 = vmax.f32 %v2705_v63, 0.0 }
 0x2bb   : > { %v2763_v47 = vsel %vm2762_vm0, %v2719_v36, %v2761_v55 }
 0x2bc   : > { %v2765_v33 = vsel %vm2764_vm1, %v2720_v14, %v2763_v47 }
 0x2bd   : > { %3682 = vmatmul.mubr.f32.vlgmr.msra.gmra.mrb[96].mxu0 %v2765_v33 }
 0x390   : > { %v2833_v45 = vpop.f32.mrb[96].mxu0 }
 0x391   : > { %v2834_v2 = vadd.f32 %v3149_v16, %v2833_v45  ;;  %v3683_v13 = vpop.f32.mrb[97].mxu0 }
 0x393   : > { %2837 = vst [vmem:[%s281_s13] sm:$0xff] %v2834_v2 }
 0x394 PF: > { %s17_s24 = sadd.s32 1, %s3854_s24  }
 0x395   : > { %p14_p5 = scmp.ge.s32.totalorder %s17_s24, 4  }
 0x397   :  { %16 = sbr.rel (!%p14_p5) target bundleno = 1 (0x1), region = 82 }

</bundles_post_ra>
